<compile_context>
chip_gen: v6e
topology: v6e:2x2x1
jax: 0.10.0
libtpu: 0.0.40
codegen_flags: <defaults>
</compile_context>

<pallas_src>
import jax
import jax.numpy as jnp
from jax.experimental import pallas as pl
from jax.experimental.pallas import tpu as pltpu

EPS = 1e-5


def bn_relu_kernel(x_ref, p_ref, o_ref):
    # x_ref: (N, TC, M) block.  p_ref: (TC, 2) = [gamma | beta].
    x = x_ref[...]
    m_count = x.shape[0] * x.shape[2]
    inv_m = 1.0 / m_count

    # Single pass over x: first and second moments per channel.
    s1 = jnp.sum(x, axis=(0, 2), keepdims=True)          # (1, TC, 1)
    s2 = jnp.sum(x * x, axis=(0, 2), keepdims=True)      # (1, TC, 1)
    mean = s1 * inv_m
    # Biased batch variance (PyTorch training-mode BN); clamp guards the
    # E[x^2] - mean^2 cancellation.
    var = jnp.maximum(s2 * inv_m - mean * mean, 0.0)

    gamma = p_ref[:, 0:1]                                 # (TC, 1)
    beta = p_ref[:, 1:2]                                  # (TC, 1)
    scale = jax.lax.rsqrt(var + EPS) * gamma              # (1, TC, 1), EUP rsqrt
    bias = beta - mean * scale                            # (1, TC, 1)

    y = x * scale + bias
    o_ref[...] = jnp.maximum(y, 0.0).astype(o_ref.dtype)


def batchnorm_relu(x_nchw, gamma, beta, *, tc=None):
    """BatchNorm2d (training-mode batch stats) + ReLU, fused in one Pallas kernel.

    x_nchw: (N, C, H, W) float32
    gamma, beta: (C,) float32
    tc: channel tile (grid depth = C // tc).  Default: 2 parallel steps so the
        two v7x TensorCores each take one block; sweep {C, C/2, C/4, C/8} on
        single-TC chips (v5e/v6e) if this op ever matters in isolation.
    """
    n, c, h, w = x_nchw.shape
    hw = h * w
    m = n * hw

    if tc is None:
        if c % 2 == 0 and (c // 2) % 8 == 0:
            tc = c // 2
        else:
            tc = c
    assert c % tc == 0, "channel count must be divisible by the channel tile"
    assert tc % 8 == 0 or tc == c, "channel tile must be sublane-aligned"

    # Native views only — no HBM transpose for any N.
    x_ncm = x_nchw.reshape(n, c, hw)
    params = jnp.stack([gamma, beta], axis=1)             # (C, 2)

    cost = pl.CostEstimate(
        flops=6 * c * m,             # sums, x*x, normalize + relu
        transcendentals=c,           # one rsqrt per channel
        bytes_accessed=8 * c * m,    # f32 read + write of the slab
    )

    out_ncm = pl.pallas_call(
        bn_relu_kernel,
        out_shape=jax.ShapeDtypeStruct((n, c, hw), x_nchw.dtype),
        grid_spec=pltpu.PrefetchScalarGridSpec(
            num_scalar_prefetch=0,
            grid=(c // tc,),
            in_specs=[
                pl.BlockSpec((n, tc, hw), lambda i: (0, i, 0)),
                pl.BlockSpec((tc, 2), lambda i: (i, 0)),
            ],
            out_specs=pl.BlockSpec((n, tc, hw), lambda i: (0, i, 0)),
        ),
        compiler_params=pltpu.CompilerParams(
            dimension_semantics=("parallel",)),
        cost_estimate=cost,
    )(x_ncm, params)

    return out_ncm.reshape(n, c, h, w)


if __name__ == "__main__":
    # Shapes implied by the module's forward: x104 = randn([1, 576, 14, 14])
    N, C, H, W = 1, 576, 14, 14

    key = jax.random.PRNGKey(0)
    kx, kg, kb = jax.random.split(key, 3)
    x = jax.random.normal(kx, (N, C, H, W), dtype=jnp.float32)
    # Deterministic synthetic BN affine parameters (shape (576,) each).
    gamma = 1.0 + 0.1 * jax.random.normal(kg, (C,), dtype=jnp.float32)
    beta = 0.1 * jax.random.normal(kb, (C,), dtype=jnp.float32)

    out = batchnorm_relu(x, gamma, beta)
    out = jax.block_until_ready(out)

    # Lightweight sanity check against a pure-JAX reference of the same math.
    mean = jnp.mean(x, axis=(0, 2, 3), keepdims=True)
    var = jnp.mean((x - mean) ** 2, axis=(0, 2, 3), keepdims=True)
    ref = (x - mean) * jax.lax.rsqrt(var + EPS)
    ref = ref * gamma.reshape(1, C, 1, 1) + beta.reshape(1, C, 1, 1)
    ref = jnp.maximum(ref, 0.0)
    assert out.shape == (N, C, H, W)
    assert jnp.max(jnp.abs(out - ref)) < 2e-4

    # TODO(synk): PyTorch training-mode BN also updates running_mean/running_var;
    # only the forward output is computed here.

    print("KERNEL_OK")
</pallas_src>

<mosaic_0001>
module attributes {stable_mosaic.version = 11 : i64} {
  func.func @bn_relu_kernel(%arg0: i32, %arg1: memref<1x288x196xf32, #tpu.memory_space<vmem>>, %arg2: memref<288x2xf32, #tpu.memory_space<vmem>>, %arg3: memref<1x288x196xf32, #tpu.memory_space<vmem>>) attributes {dimension_semantics = [#tpu.dimension_semantics<parallel>], iteration_bounds = array<i64: 2>, scalar_prefetch = 0 : i64, scratch_operands = 0 : i64, tpu.core_type = #tpu.core_type<tc>, window_params = [{transform_indices = @transform_0, window_bounds = array<i64: 1, 288, 196>}, {transform_indices = @transform_1, window_bounds = array<i64: 288, 2>}, {transform_indices = @transform_2, window_bounds = array<i64: 1, 288, 196>}]} {
    %c0 = arith.constant 0 : index
    %c0_0 = arith.constant 0 : index
    %c0_1 = arith.constant 0 : index
    %0 = vector.load %arg1[%c0, %c0_0, %c0_1] : memref<1x288x196xf32, #tpu.memory_space<vmem>>, vector<1x288x196xf32>
    %cst = arith.constant dense<0.000000e+00> : vector<288xf32>
    %1 = vector.multi_reduction <add>, %0, %cst [0, 2] : vector<1x288x196xf32> to vector<288xf32>
    %2 = vector.shape_cast %1 : vector<288xf32> to vector<1x288x1xf32>
    %3 = arith.mulf %0, %0 : vector<1x288x196xf32>
    %cst_2 = arith.constant dense<0.000000e+00> : vector<288xf32>
    %4 = vector.multi_reduction <add>, %3, %cst_2 [0, 2] : vector<1x288x196xf32> to vector<288xf32>
    %5 = vector.shape_cast %4 : vector<288xf32> to vector<1x288x1xf32>
    %cst_3 = arith.constant 0.00510204071 : f32
    %6 = vector.broadcast %cst_3 : f32 to vector<1x288x1xf32>
    %7 = arith.mulf %2, %6 : vector<1x288x1xf32>
    %cst_4 = arith.constant 0.00510204071 : f32
    %8 = vector.broadcast %cst_4 : f32 to vector<1x288x1xf32>
    %9 = arith.mulf %5, %8 : vector<1x288x1xf32>
    %10 = arith.mulf %7, %7 : vector<1x288x1xf32>
    %11 = arith.subf %9, %10 : vector<1x288x1xf32>
    %cst_5 = arith.constant 0.000000e+00 : f32
    %12 = vector.broadcast %cst_5 : f32 to vector<1x288x1xf32>
    %13 = arith.maximumf %11, %12 : vector<1x288x1xf32>
    %c0_6 = arith.constant 0 : index
    %c0_7 = arith.constant 0 : index
    %14 = vector.load %arg2[%c0_6, %c0_7] : memref<288x2xf32, #tpu.memory_space<vmem>>, vector<288x1xf32>
    %c0_8 = arith.constant 0 : index
    %c1 = arith.constant 1 : index
    %15 = vector.load %arg2[%c0_8, %c1] : memref<288x2xf32, #tpu.memory_space<vmem>>, vector<288x1xf32>
    %cst_9 = arith.constant 9.99999974E-6 : f32
    %16 = vector.broadcast %cst_9 : f32 to vector<1x288x1xf32>
    %17 = arith.addf %13, %16 : vector<1x288x1xf32>
    %18 = math.rsqrt %17 : vector<1x288x1xf32>
    %19 = vector.shape_cast %14 : vector<288x1xf32> to vector<1x288x1xf32>
    %20 = arith.mulf %18, %19 : vector<1x288x1xf32>
    %21 = arith.mulf %7, %20 : vector<1x288x1xf32>
    %22 = vector.shape_cast %15 : vector<288x1xf32> to vector<1x288x1xf32>
    %23 = arith.subf %22, %21 : vector<1x288x1xf32>
    %24 = vector.broadcast %20 : vector<1x288x1xf32> to vector<1x288x196xf32>
    %25 = arith.mulf %0, %24 : vector<1x288x196xf32>
    %26 = vector.broadcast %23 : vector<1x288x1xf32> to vector<1x288x196xf32>
    %27 = arith.addf %25, %26 : vector<1x288x196xf32>
    %cst_10 = arith.constant 0.000000e+00 : f32
    %28 = vector.broadcast %cst_10 : f32 to vector<1x288x196xf32>
    %29 = arith.maximumf %27, %28 : vector<1x288x196xf32>
    %c0_11 = arith.constant 0 : index
    %c0_12 = arith.constant 0 : index
    %c0_13 = arith.constant 0 : index
    %30 = vector.load %arg3[%c0_11, %c0_12, %c0_13] : memref<1x288x196xf32, #tpu.memory_space<vmem>>, vector<1x288x196xf32>
    tpu.vector_store %arg3[%c0_11, %c0_12, %c0_13], %29 {strides = array<i32>} : memref<1x288x196xf32, #tpu.memory_space<vmem>>, vector<1x288x196xf32>,
    return
  }
  func.func @transform_0(%arg0: i32) -> (i32, i32, i32) {
    %c0_i32 = arith.constant 0 : i32
    %c0_i32_0 = arith.constant 0 : i32
    %c0_i32_1 = arith.constant 0 : i32
    return %c0_i32, %arg0, %c0_i32_0 : i32, i32, i32
  }
  func.func @transform_1(%arg0: i32) -> (i32, i32) {
    %c0_i32 = arith.constant 0 : i32
    %c0_i32_0 = arith.constant 0 : i32
    return %arg0, %c0_i32 : i32, i32
  }
  func.func @transform_2(%arg0: i32) -> (i32, i32, i32) {
    %c0_i32 = arith.constant 0 : i32
    %c0_i32_0 = arith.constant 0 : i32
    %c0_i32_1 = arith.constant 0 : i32
    return %c0_i32, %arg0, %c0_i32_0 : i32, i32, i32
  }
}

</mosaic_0001>

<bundles_post_ra>
// kernel: tpu_custom_call.1
= control target key start
LH: loop header
LB: loop body
LE: loop exit
PB: predicated region body
PF: predicated region fallthrough
CT: control target
= control target key end

     0   :  { %s2064_s9 = smov 0   ;;  %s3586_s0 = inlined_call_operand.vmem [shape: f32[1,576,196], index: 0, kind: input, shape index: {}]   ;;  %s3587_s1 = inlined_call_operand.vmem [shape: f32[576,2], index: 1, kind: input, shape index: {}]   ;;  %s3588_s2 = inlined_call_operand.vmem [shape: f32[1,576,196], index: 2, kind: output, shape index: {}]  }
   0x1 LB: > { %s1865_s10 = sadd.s32 4294967295, %s2044_s9   ;;  %p1869_p0 = scmp.ge.s32.totalorder %s2044_s9, 1  ;;  %s2044_s9 = sphi %s2064_s9, %s12_s9  }
   0x2   : > { %p125_p1 = scmp.lt.s32.totalorder %s2044_s9, 3 }
   0x4   : > { %p126_p2 = pnand %p1869_p0, %p125_p1 }
   0x6   : > { %129 = sbr.rel (%p126_p2) target bundleno = 609 (0x261), region = 28 }
   0xb   : > { %s154_s11 = smul.u32 36, %s1865_s10  ;;  %vm246_vm0 = vcmask 556032   ;;  %s2047_s20 = smov 1  }
   0xd   : > { %p155_p3 = scmp.lt.s32.totalorder %s154_s11, 71 }
   0xf   : > { %s3716_s11 = smov (!%p155_p3, %s154_s11), 71 }
  0x10   : > { %s1877_s12 = sshll.u32 %s3716_s11, 4  ;;  %s1872_s16 = sshll.u32 %s3716_s11, 3 }
  0x11   : > { %s2080_s15 = scalar_lea.vmem %s3586_s0, %s1877_s12  ;;  %s2745_s19 = scalar_lea.vmem %s3587_s1, %s1872_s16 }
  0x12   : > { %v2083_v0 = vld [vmem:[%s2080_s15 + $0x20] sm:$0xff]  ;;  %v2086_v1 = vld [vmem:[%s2080_s15 + $0x28] sm:$0xff]  ;;  %v2097_v5 = vld [vmem:[%s2080_s15 + $0x30] sm:$0xff]  ;;  %s3339_s23 = scalar_lea.vmem %s3588_s2, %s1877_s12 }
  0x13   : > { %v2089_v2 = vld [vmem:[%s2080_s15] sm:$0xff]  ;;  %v255_v3 = vsel %vm246_vm0, %v2086_v1, 0.0  ;;  %v2094_v4 = vld [vmem:[%s2080_s15 + $0x8] sm:$0xff]  ;;  %v2100_v6 = vld [vmem:[%s2080_s15 + $0x38] sm:$0xff] }
  0x14   : > { %v256_v7 = vadd.f32 %v255_v3, %v2083_v0  ;;  %v247_v8 = vsel %vm246_vm0, %v2094_v4, 0.0  ;;  %v259_v9 = vsel %vm246_vm0, %v2100_v6, 0.0  ;;  %v2108_v10 = vld [vmem:[%s2080_s15 + $0x10] sm:$0xff]  ;;  %v2111_v11 = vld [vmem:[%s2080_s15 + $0x18] sm:$0xff]  ;;  %v2120_v15 = vld [vmem:[%s2080_s15 + $0x48] sm:$0xff] }
  0x15   : > { %v248_v12 = vadd.f32 %v247_v8, %v2089_v2  ;;  %v251_v13 = vsel %vm246_vm0, %v2111_v11, 0.0  ;;  %v2117_v14 = vld [vmem:[%s2080_s15 + $0x58] sm:$0xff]  ;;  %v260_v16 = vadd.f32 %v259_v9, %v2097_v5  ;;  %v2125_v18 = vld [vmem:[%s2080_s15 + $0x50] sm:$0xff]  ;;  %v2130_v20 = vld [vmem:[%s2080_s15 + $0x40] sm:$0xff]  ;;  %v263_v21 = vsel %vm246_vm0, %v2120_v15, 0.0 }
  0x16   : > { %257 = vadd.xlane.f32.xlu1 %v256_v7  ;;  %v252_v17 = vadd.f32 %v251_v13, %v2108_v10  ;;  %v267_v19 = vsel %vm246_vm0, %v2117_v14, 0.0  ;;  %v2135_v22 = vld [vmem:[%s2080_s15 + $0x78] sm:$0xff]  ;;  %v2138_v23 = vld [vmem:[%s2080_s15 + $0x68] sm:$0xff]  ;;  %v264_v25 = vadd.f32 %v263_v21, %v2130_v20  ;;  %v2143_v26 = vld [vmem:[%s2080_s15 + $0x70] sm:$0xff] }
  0x17   : > { %249 = vadd.xlane.f32.xlu0 %v248_v12  ;;  %v268_v24 = vadd.f32 %v267_v19, %v2125_v18  ;;  %v275_v27 = vsel %vm246_vm0, %v2135_v22, 0.0  ;;  %v2148_v28 = vld [vmem:[%s2080_s15 + $0x60] sm:$0xff]  ;;  %v271_v29 = vsel %vm246_vm0, %v2138_v23, 0.0  ;;  %v2153_v30 = vld [vmem:[%s2080_s15 + $0x98] sm:$0xff]  ;;  %v2156_v31 = vld [vmem:[%s2080_s15 + $0x88] sm:$0xff] }
  0x18   : > { %v276_v32 = vadd.f32 %v275_v27, %v2143_v26  ;;  %v272_v33 = vadd.f32 %v271_v29, %v2148_v28  ;;  %v2161_v34 = vld [vmem:[%s2080_s15 + $0x90] sm:$0xff]  ;;  %v283_v35 = vsel %vm246_vm0, %v2153_v30, 0.0  ;;  %v2166_v36 = vld [vmem:[%s2080_s15 + $0x80] sm:$0xff]  ;;  %v279_v37 = vsel %vm246_vm0, %v2156_v31, 0.0  ;;  %v2171_v38 = vld [vmem:[%s2080_s15 + $0xb8] sm:$0xff] }
  0x19   : > { %v2174_v39 = vld [vmem:[%s2080_s15 + $0xa8] sm:$0xff]  ;;  %v284_v40 = vadd.f32 %v283_v35, %v2161_v34  ;;  %v280_v41 = vadd.f32 %v279_v37, %v2166_v36  ;;  %v2179_v42 = vld [vmem:[%s2080_s15 + $0xb0] sm:$0xff]  ;;  %v291_v43 = vsel %vm246_vm0, %v2171_v38, 0.0  ;;  %v2184_v44 = vld [vmem:[%s2080_s15 + $0xa0] sm:$0xff] }
  0x1a   : > { %261 = vadd.xlane.f32.xlu1 %v260_v16  ;;  %v287_v45 = vsel %vm246_vm0, %v2174_v39, 0.0  ;;  %v2189_v46 = vld [vmem:[%s2080_s15 + $0xd8] sm:$0xff]  ;;  %v2192_v47 = vld [vmem:[%s2080_s15 + $0xc8] sm:$0xff]  ;;  %v292_v48 = vadd.f32 %v291_v43, %v2179_v42  ;;  %v2197_v50 = vld [vmem:[%s2080_s15 + $0xd0] sm:$0xff] }
  0x1b   : > { %253 = vadd.xlane.f32.xlu0 %v252_v17  ;;  %v288_v49 = vadd.f32 %v287_v45, %v2184_v44  ;;  %v299_v51 = vsel %vm246_vm0, %v2189_v46, 0.0  ;;  %v2202_v52 = vld [vmem:[%s2080_s15 + $0xc0] sm:$0xff]  ;;  %v295_v53 = vsel %vm246_vm0, %v2192_v47, 0.0  ;;  %v2207_v54 = vld [vmem:[%s2080_s15 + $0xf8] sm:$0xff]  ;;  %v2210_v55 = vld [vmem:[%s2080_s15 + $0xe8] sm:$0xff] }
  0x1c   : > { %v300_v56 = vadd.f32 %v299_v51, %v2197_v50  ;;  %v296_v57 = vadd.f32 %v295_v53, %v2202_v52  ;;  %v2215_v58 = vld [vmem:[%s2080_s15 + $0xf0] sm:$0xff]  ;;  %v307_v59 = vsel %vm246_vm0, %v2207_v54, 0.0  ;;  %v2220_v60 = vld [vmem:[%s2080_s15 + $0xe0] sm:$0xff]  ;;  %v303_v61 = vsel %vm246_vm0, %v2210_v55, 0.0  ;;  %v2225_v62 = vld [vmem:[%s2080_s15 + $0x118] sm:$0xff] }
  0x1d   : > { %v2228_v63 = vld [vmem:[%s2080_s15 + $0x108] sm:$0xff]  ;;  %v308_v3 = vadd.f32 %v307_v59, %v2215_v58  ;;  %v304_v7 = vadd.f32 %v303_v61, %v2220_v60  ;;  %v2233_v8 = vld [vmem:[%s2080_s15 + $0x110] sm:$0xff]  ;;  %v315_v9 = vsel %vm246_vm0, %v2225_v62, 0.0  ;;  %v2238_v12 = vld [vmem:[%s2080_s15 + $0x100] sm:$0xff] }
  0x1e   : > { %269 = vadd.xlane.f32.xlu1 %v268_v24  ;;  %v311_v13 = vsel %vm246_vm0, %v2228_v63, 0.0  ;;  %v2243_v16 = vld [vmem:[%s2080_s15 + $0x138] sm:$0xff]  ;;  %v2246_v17 = vld [vmem:[%s2080_s15 + $0x128] sm:$0xff]  ;;  %v316_v19 = vadd.f32 %v315_v9, %v2233_v8  ;;  %v2251_v24 = vld [vmem:[%s2080_s15 + $0x130] sm:$0xff] }
  0x1f   : > { %265 = vadd.xlane.f32.xlu0 %v264_v25  ;;  %v312_v21 = vadd.f32 %v311_v13, %v2238_v12  ;;  %v323_v25 = vsel %vm246_vm0, %v2243_v16, 0.0  ;;  %v2256_v27 = vld [vmem:[%s2080_s15 + $0x120] sm:$0xff]  ;;  %v319_v29 = vsel %vm246_vm0, %v2246_v17, 0.0 }
  0x20   : > { %v324_v35 = vadd.f32 %v323_v25, %v2251_v24  ;;  %v320_v37 = vadd.f32 %v319_v29, %v2256_v27  ;;  %v2274_v43 = vld [vmem:[%s2080_s15 + $0x140] sm:$0xff] }
  0x21   : > { %v2292_v59 = vld [vmem:[%s2080_s15 + $0x160] sm:$0xff] }
  0x22   : > { %277 = vadd.xlane.f32.xlu1 %v276_v32  ;;  %v2261_v32 = vld [vmem:[%s2080_s15 + $0x158] sm:$0xff]  ;;  %v2310_v25 = vld [vmem:[%s2080_s15 + $0x180] sm:$0xff] }
  0x23   : > { %273 = vadd.xlane.f32.xlu0 %v272_v33  ;;  %v2264_v33 = vld [vmem:[%s2080_s15 + $0x148] sm:$0xff]  ;;  %3634 = vst [vmem:[#allocation5_spill] sm:$0xff] %v2310_v25 }
  0x24   : > { %v327_v45 = vsel %vm246_vm0, %v2264_v33, 0.0 }
  0x25   : > { %v328_v53 = vadd.f32 %v327_v45, %v2274_v43 }
  0x26   : > { %285 = vadd.xlane.f32.xlu1 %v284_v40  ;;  %v2269_v40 = vld [vmem:[%s2080_s15 + $0x150] sm:$0xff] }
  0x27   : > { %281 = vadd.xlane.f32.xlu0 %v280_v41  ;;  %v331_v41 = vsel %vm246_vm0, %v2261_v32, 0.0 }
  0x28   : > { %v332_v51 = vadd.f32 %v331_v41, %v2269_v40 }
  0x2a   : > { %293 = vadd.xlane.f32.xlu1 %v292_v48  ;;  %v2279_v48 = vld [vmem:[%s2080_s15 + $0x178] sm:$0xff] }
  0x2b   : > { %289 = vadd.xlane.f32.xlu0 %v288_v49  ;;  %v2282_v49 = vld [vmem:[%s2080_s15 + $0x168] sm:$0xff] }
  0x2c   : > { %v335_v61 = vsel %vm246_vm0, %v2282_v49, 0.0 }
  0x2d   : > { %v336_v13 = vadd.f32 %v335_v61, %v2292_v59 }
  0x2e   : > { %301 = vadd.xlane.f32.xlu1 %v300_v56  ;;  %v2287_v56 = vld [vmem:[%s2080_s15 + $0x170] sm:$0xff] }
  0x2f   : > { %297 = vadd.xlane.f32.xlu0 %v296_v57  ;;  %v339_v57 = vsel %vm246_vm0, %v2279_v48, 0.0 }
  0x30   : > { %v340_v9 = vadd.f32 %v339_v57, %v2287_v56  ;;  %v2328_v57 = vld [vmem:[%s2080_s15 + $0x1a0] sm:$0xff] }
  0x31   : > { %3638 = vst [vmem:[#allocation9_spill] sm:$0xff] %v2328_v57 }
  0x32   : > { %309 = vadd.xlane.f32.xlu1 %v308_v3  ;;  %v2297_v3 = vld [vmem:[%s2080_s15 + $0x198] sm:$0xff] }
  0x33   : > { %305 = vadd.xlane.f32.xlu0 %v304_v7  ;;  %3631 = vst [vmem:[#allocation2_spill] sm:$0xff] %v2297_v3  ;;  %v2300_v7 = vld [vmem:[%s2080_s15 + $0x188] sm:$0xff] }
  0x34   : > { %3632 = vst [vmem:[#allocation3_spill] sm:$0xff] %v2300_v7  ;;  %v343_v29 = vsel %vm246_vm0, %v2300_v7, 0.0  ;;  %v2333_v7 = vld [vmem:[%s2080_s15 + $0x1d8] sm:$0xff] }
  0x35   : > { %v344_v45 = vadd.f32 %v343_v29, %v2310_v25  ;;  %3639 = vst [vmem:[#allocation10_spill] sm:$0xff] %v2333_v7  ;;  %v2341_v29 = vld [vmem:[%s2080_s15 + $0x1d0] sm:$0xff] }
  0x36   : > { %317 = vadd.xlane.f32.xlu1 %v316_v19  ;;  %v2305_v19 = vld [vmem:[%s2080_s15 + $0x190] sm:$0xff]  ;;  %3641 = vst [vmem:[#allocation12_spill] sm:$0xff] %v2341_v29 }
  0x37   : > { %313 = vadd.xlane.f32.xlu0 %v312_v21  ;;  %3633 = vst [vmem:[#allocation4_spill] sm:$0xff] %v2305_v19  ;;  %v347_v21 = vsel %vm246_vm0, %v2297_v3, 0.0  ;;  %v2390_v3 = vld [vmem:[%s2080_s15 + $0x228] sm:$0xff] }
  0x38   : > { %v348_v41 = vadd.f32 %v347_v21, %v2305_v19  ;;  %v2351_v19 = vld [vmem:[%s2080_s15 + $0x1f8] sm:$0xff]  ;;  %3650 = vst [vmem:[#allocation21_spill] sm:$0xff] %v2390_v3 }
  0x39   : > { %3643 = vst [vmem:[#allocation14_spill] sm:$0xff] %v2351_v19 }
  0x3a   : > { %325 = vadd.xlane.f32.xlu1 %v324_v35  ;;  %v2315_v35 = vld [vmem:[%s2080_s15 + $0x1b8] sm:$0xff] }
  0x3b   : > { %321 = vadd.xlane.f32.xlu0 %v320_v37  ;;  %3635 = vst [vmem:[#allocation6_spill] sm:$0xff] %v2315_v35  ;;  %v2318_v37 = vld [vmem:[%s2080_s15 + $0x1a8] sm:$0xff] }
  0x3c   : > { %3636 = vst [vmem:[#allocation7_spill] sm:$0xff] %v2318_v37  ;;  %v351_v61 = vsel %vm246_vm0, %v2318_v37, 0.0  ;;  %v2346_v37 = vld [vmem:[%s2080_s15 + $0x1c0] sm:$0xff] }
  0x3d   : > { %v352_v21 = vadd.f32 %v351_v61, %v2328_v57  ;;  %3642 = vst [vmem:[#allocation13_spill] sm:$0xff] %v2346_v37  ;;  %v2359_v61 = vld [vmem:[%s2080_s15 + $0x1f0] sm:$0xff] }
  0x3e   : > { %333 = vadd.xlane.f32.xlu1 %v332_v51  ;;  %v2323_v51 = vld [vmem:[%s2080_s15 + $0x1b0] sm:$0xff] }
  0x3f   : > { %329 = vadd.xlane.f32.xlu0 %v328_v53  ;;  %3637 = vst [vmem:[#allocation8_spill] sm:$0xff] %v2323_v51  ;;  %v355_v53 = vsel %vm246_vm0, %v2315_v35, 0.0  ;;  %v363_v35 = vsel %vm246_vm0, %v2333_v7, 0.0  ;;  %v371_v7 = vsel %vm246_vm0, %v2351_v19, 0.0 }
  0x42   : > { %341 = vadd.xlane.f32.xlu1 %v340_v9  ;;  %v2336_v9 = vld [vmem:[%s2080_s15 + $0x1c8] sm:$0xff] }
  0x43   : > { %337 = vadd.xlane.f32.xlu0 %v336_v13  ;;  %3640 = vst [vmem:[#allocation11_spill] sm:$0xff] %v2336_v9  ;;  %v356_v13 = vadd.f32 %v355_v53, %v2323_v51  ;;  %v359_v25 = vsel %vm246_vm0, %v2336_v9, 0.0  ;;  %v2364_v9 = vld [vmem:[%s2080_s15 + $0x1e0] sm:$0xff]  ;;  %v2369_v51 = vld [vmem:[%s2080_s15 + $0x218] sm:$0xff] }
  0x44   : > { %v360_v53 = vadd.f32 %v359_v25, %v2346_v37  ;;  %3645 = vst [vmem:[#allocation16_spill] sm:$0xff] %v2364_v9  ;;  %3646 = vst [vmem:[#allocation17_spill] sm:$0xff] %v2369_v51  ;;  %v379_v19 = vsel %vm246_vm0, %v2369_v51, 0.0  ;;  %v2382_v37 = vld [vmem:[%s2080_s15 + $0x200] sm:$0xff]  ;;  %v394_v51 = vmul.f32 %v2111_v11, %v2111_v11  ;;  %v391_v11 = vmul.f32 %v2089_v2, %v2089_v2 }
  0x45   : > { %3648 = vst [vmem:[#allocation19_spill] sm:$0xff] %v2382_v37  ;;  %v395_v2 = vmul.f32 %v2083_v0, %v2083_v0  ;;  %v399_v0 = vmul.f32 %v2130_v20, %v2130_v20  ;;  %v403_v20 = vmul.f32 %v2148_v28, %v2148_v28  ;;  %v407_v28 = vmul.f32 %v2166_v36, %v2166_v36 }
  0x46   : > { %349 = vadd.xlane.f32.xlu1 %v348_v41  ;;  %v2354_v41 = vld [vmem:[%s2080_s15 + $0x1e8] sm:$0xff]  ;;  %v411_v36 = vmul.f32 %v2184_v44, %v2184_v44  ;;  %v415_v44 = vmul.f32 %v2202_v52, %v2202_v52  ;;  %v419_v52 = vmul.f32 %v2220_v60, %v2220_v60  ;;  %v423_v60 = vmul.f32 %v2238_v12, %v2238_v12 }
  0x47   : > { %345 = vadd.xlane.f32.xlu0 %v344_v45  ;;  %3644 = vst [vmem:[#allocation15_spill] sm:$0xff] %v2354_v41  ;;  %v364_v45 = vadd.f32 %v363_v35, %v2341_v29  ;;  %v367_v57 = vsel %vm246_vm0, %v2354_v41, 0.0  ;;  %v372_v35 = vadd.f32 %v371_v7, %v2359_v61  ;;  %v2387_v29 = vld [vmem:[%s2080_s15 + $0x238] sm:$0xff]  ;;  %v427_v12 = vmul.f32 %v2256_v27, %v2256_v27 }
  0x48   : > { %v368_v25 = vadd.f32 %v367_v57, %v2364_v9  ;;  %3649 = vst [vmem:[#allocation20_spill] sm:$0xff] %v2387_v29  ;;  %v2402_v9 = vld [vmem:[%s2080_s15 + $0x220] sm:$0xff]  ;;  %v431_v27 = vmul.f32 %v2274_v43, %v2274_v43  ;;  %v435_v43 = vmul.f32 %v2292_v59, %v2292_v59 }
  0x4a   : > { %357 = vadd.xlane.f32.xlu1 %v356_v13  ;;  %v2372_v13 = vld [vmem:[%s2080_s15 + $0x208] sm:$0xff] }
  0x4b   : > { %353 = vadd.xlane.f32.xlu0 %v352_v21  ;;  %3647 = vst [vmem:[#allocation18_spill] sm:$0xff] %v2372_v13  ;;  %v2377_v21 = vld [vmem:[%s2080_s15 + $0x210] sm:$0xff]  ;;  %v375_v41 = vsel %vm246_vm0, %v2372_v13, 0.0  ;;  %v383_v13 = vsel %vm246_vm0, %v2390_v3, 0.0  ;;  %v398_v3 = vmul.f32 %v2100_v6, %v2100_v6  ;;  %v402_v6 = vmul.f32 %v2117_v14, %v2117_v14 }
  0x4c   : > { %v380_v7 = vadd.f32 %v379_v19, %v2377_v21  ;;  %v376_v57 = vadd.f32 %v375_v41, %v2382_v37  ;;  %v393_v41 = vmul.f32 %v2108_v10, %v2108_v10  ;;  %v397_v10 = vmul.f32 %v2097_v5, %v2097_v5 }
  0x4d   : > { %v401_v5 = vmul.f32 %v2125_v18, %v2125_v18  ;;  %v406_v14 = vmul.f32 %v2135_v22, %v2135_v22  ;;  %v405_v18 = vmul.f32 %v2143_v26, %v2143_v26  ;;  %v410_v22 = vmul.f32 %v2153_v30, %v2153_v30 }
  0x4e   : > { %365 = vadd.xlane.f32.xlu1 %v364_v45  ;;  %v2395_v45 = vld [vmem:[%s2080_s15 + $0x230] sm:$0xff]  ;;  %v409_v26 = vmul.f32 %v2161_v34, %v2161_v34  ;;  %v414_v30 = vmul.f32 %v2171_v38, %v2171_v38  ;;  %v413_v34 = vmul.f32 %v2179_v42, %v2179_v42  ;;  %v418_v38 = vmul.f32 %v2189_v46, %v2189_v46 }
  0x4f   : > { %361 = vadd.xlane.f32.xlu0 %v360_v53  ;;  %v387_v53 = vsel %vm246_vm0, %v2387_v29, 0.0  ;;  %v467_v29 = vsel %vm246_vm0, %v394_v51, 0.0  ;;  %v475_v51 = vsel %vm246_vm0, %v398_v3, 0.0  ;;  %v483_v3 = vsel %vm246_vm0, %v402_v6, 0.0 }
  0x50   : > { %v388_v19 = vadd.f32 %v387_v53, %v2395_v45  ;;  %v417_v42 = vmul.f32 %v2197_v50, %v2197_v50  ;;  %v422_v46 = vmul.f32 %v2207_v54, %v2207_v54  ;;  %v421_v50 = vmul.f32 %v2215_v58, %v2215_v58 }
  0x51   : > { %v426_v54 = vmul.f32 %v2225_v62, %v2225_v62  ;;  %v425_v58 = vmul.f32 %v2233_v8, %v2233_v8  ;;  %v430_v62 = vmul.f32 %v2243_v16, %v2243_v16  ;;  %v429_v8 = vmul.f32 %v2251_v24, %v2251_v24 }
  0x52   : > { %373 = vadd.xlane.f32.xlu1 %v372_v35  ;;  %v392_v35 = vmul.f32 %v2094_v4, %v2094_v4  ;;  %v396_v4 = vmul.f32 %v2086_v1, %v2086_v1  ;;  %v400_v1 = vmul.f32 %v2120_v15, %v2120_v15  ;;  %v404_v15 = vmul.f32 %v2138_v23, %v2138_v23 }
  0x53   : > { %369 = vadd.xlane.f32.xlu0 %v368_v25  ;;  %v384_v25 = vadd.f32 %v383_v13, %v2402_v9  ;;  %v408_v23 = vmul.f32 %v2156_v31, %v2156_v31  ;;  %v412_v31 = vmul.f32 %v2174_v39, %v2174_v39  ;;  %v416_v39 = vmul.f32 %v2192_v47, %v2192_v47 }
  0x54   : > { %v463_v37 = vsel %vm246_vm0, %v392_v35, 0.0  ;;  %v479_v53 = vsel %vm246_vm0, %v400_v1, 0.0  ;;  %v484_v35 = vadd.f32 %v483_v3, %v401_v5  ;;  %v420_v47 = vmul.f32 %v2210_v55, %v2210_v55 }
  0x55   : > { %v464_v13 = vadd.f32 %v463_v37, %v391_v11  ;;  %v503_v6 = vsel %vm246_vm0, %v412_v31, 0.0  ;;  %v511_v5 = vsel %vm246_vm0, %v416_v39, 0.0  ;;  %v424_v55 = vmul.f32 %v2228_v63, %v2228_v63  ;;  %v3652_v31 = vld [vmem:[#allocation3_spill] sm:$0xff] }
  0x56   : > { %381 = vadd.xlane.f32.xlu1 %v380_v7  ;;  %v468_v7 = vadd.f32 %v467_v29, %v393_v41  ;;  %v476_v29 = vadd.f32 %v475_v51, %v397_v10  ;;  %v491_v41 = vsel %vm246_vm0, %v406_v14, 0.0  ;;  %v495_v10 = vsel %vm246_vm0, %v408_v23, 0.0 }
  0x57   : > { %377 = vadd.xlane.f32.xlu0 %v376_v57  ;;  %v471_v57 = vsel %vm246_vm0, %v396_v4, 0.0  ;;  %v492_v11 = vadd.f32 %v491_v41, %v405_v18  ;;  %v496_v51 = vadd.f32 %v495_v10, %v407_v28  ;;  %v504_v1 = vadd.f32 %v503_v6, %v411_v36  ;;  %v3654_v36 = vld [vmem:[#allocation5_spill] sm:$0xff] }
  0x58   : > { %v472_v37 = vadd.f32 %v471_v57, %v395_v2  ;;  %v507_v2 = vsel %vm246_vm0, %v414_v30, 0.0  ;;  %v512_v3 = vadd.f32 %v511_v5, %v415_v44  ;;  %v519_v14 = vsel %vm246_vm0, %v420_v47, 0.0  ;;  %v3651_v30 = vld [vmem:[#allocation2_spill] sm:$0xff]  ;;  %v3658_v47 = vld [vmem:[#allocation9_spill] sm:$0xff] }
  0x59   : > { %v508_v57 = vadd.f32 %v507_v2, %v413_v34  ;;  %v527_v18 = vsel %vm246_vm0, %v424_v55, 0.0  ;;  %v428_v63 = vmul.f32 %v2246_v17, %v2246_v17  ;;  %v434_v16 = vmul.f32 %v2261_v32, %v2261_v32  ;;  %v3653_v34 = vld [vmem:[#allocation4_spill] sm:$0xff] }
  0x5a   : > { %389 = vadd.xlane.f32.xlu1 %v388_v19  ;;  %v480_v19 = vadd.f32 %v479_v53, %v399_v0  ;;  %v523_v0 = vsel %vm246_vm0, %v422_v46, 0.0  ;;  %v528_v41 = vadd.f32 %v527_v18, %v423_v60  ;;  %v432_v17 = vmul.f32 %v2264_v33, %v2264_v33  ;;  %v3661_v55 = vld [vmem:[#allocation12_spill] sm:$0xff] }
  0x5b   : > { %385 = vadd.xlane.f32.xlu0 %v384_v25  ;;  %v487_v25 = vsel %vm246_vm0, %v404_v15, 0.0  ;;  %v524_v53 = vadd.f32 %v523_v0, %v421_v50  ;;  %v520_v15 = vadd.f32 %v519_v14, %v419_v52  ;;  %v433_v24 = vmul.f32 %v2269_v40, %v2269_v40  ;;  %v3659_v50 = vld [vmem:[#allocation10_spill] sm:$0xff]  ;;  %v3660_v52 = vld [vmem:[#allocation11_spill] sm:$0xff] }
  0x5c   : > { %v488_v4 = vadd.f32 %v487_v25, %v403_v20  ;;  %v539_v20 = vsel %vm246_vm0, %v430_v62, 0.0  ;;  %v438_v32 = vmul.f32 %v2279_v48, %v2279_v48  ;;  %v436_v33 = vmul.f32 %v2282_v49, %v2282_v49  ;;  %v3663_v62 = vld [vmem:[#allocation14_spill] sm:$0xff] }
  0x5d   : > { %v540_v25 = vadd.f32 %v539_v20, %v429_v8  ;;  %v437_v40 = vmul.f32 %v2287_v56, %v2287_v56  ;;  %v442_v48 = vmul.f32 %v3651_v30, %v3651_v30  ;;  %v440_v49 = vmul.f32 %v3652_v31, %v3652_v31  ;;  %v3670_v30 = vld [vmem:[#allocation21_spill] sm:$0xff] }
  0x5e   : > { %469 = vadd.xlane.f32.xlu1 %v468_v7  ;;  %v499_v7 = vsel %vm246_vm0, %v410_v22, 0.0  ;;  %v535_v22 = vsel %vm246_vm0, %v428_v63, 0.0  ;;  %v555_v28 = vsel %vm246_vm0, %v438_v32, 0.0  ;;  %v551_v10 = vsel %vm246_vm0, %v436_v33, 0.0 }
  0x5f   : > { %465 = vadd.xlane.f32.xlu0 %v464_v13  ;;  %v500_v13 = vadd.f32 %v499_v7, %v409_v26  ;;  %v536_v23 = vadd.f32 %v535_v22, %v427_v12  ;;  %v543_v26 = vsel %vm246_vm0, %v432_v17, 0.0  ;;  %v441_v56 = vmul.f32 %v3653_v34, %v3653_v34  ;;  %v3665_v22 = vld [vmem:[#allocation16_spill] sm:$0xff] }
  0x60   : > { %v544_v7 = vadd.f32 %v543_v26, %v431_v27  ;;  %v563_v2 = vsel %vm246_vm0, %v442_v48, 0.0  ;;  %v439_v59 = vmul.f32 %v3654_v36, %v3654_v36  ;;  %v559_v39 = vsel %vm246_vm0, %v440_v49, 0.0 }
  0x61   : > { %v454_v18 = vmul.f32 %v3663_v62, %v3663_v62  ;;  %v453_v20 = vmul.f32 %v2359_v61, %v2359_v61  ;;  %v451_v17 = vmul.f32 %v3665_v22, %v3665_v22  ;;  %v457_v61 = vmul.f32 %v2377_v21, %v2377_v21 }
  0x62   : > { %477 = vadd.xlane.f32.xlu1 %v476_v29  ;;  %v515_v29 = vsel %vm246_vm0, %v418_v38, 0.0  ;;  %v3655_v38 = vld [vmem:[#allocation6_spill] sm:$0xff]  ;;  %v560_v46 = vadd.f32 %v559_v39, %v439_v59  ;;  %v460_v48 = vmul.f32 %v3670_v30, %v3670_v30  ;;  %v461_v21 = vmul.f32 %v2395_v45, %v2395_v45 }
  0x63   : > { %473 = vadd.xlane.f32.xlu0 %v472_v37  ;;  %v516_v37 = vadd.f32 %v515_v29, %v417_v42  ;;  %v446_v6 = vmul.f32 %v3655_v38, %v3655_v38  ;;  %v3657_v29 = vld [vmem:[#allocation8_spill] sm:$0xff] }
  0x64   : > { %v445_v44 = vmul.f32 %v3657_v29, %v3657_v29  ;;  %v599_v34 = vsel %vm246_vm0, %v460_v48, 0.0 }
  0x65   : > { %v571_v5 = vsel %vm246_vm0, %v446_v6, 0.0 }
  0x66   : > { %485 = vadd.xlane.f32.xlu1 %v484_v35  ;;  %v531_v35 = vsel %vm246_vm0, %v426_v54, 0.0  ;;  %v448_v54 = vmul.f32 %v3660_v52, %v3660_v52  ;;  %v572_v14 = vadd.f32 %v571_v5, %v445_v44 }
  0x67   : > { %481 = vadd.xlane.f32.xlu0 %v480_v19  ;;  %v532_v19 = vadd.f32 %v531_v35, %v425_v58  ;;  %v3662_v35 = vld [vmem:[#allocation13_spill] sm:$0xff] }
  0x68   : > { %v447_v60 = vmul.f32 %v3662_v35, %v3662_v35  ;;  %v575_v63 = vsel %vm246_vm0, %v448_v54, 0.0 }
  0x6a   : > { %493 = vadd.xlane.f32.xlu1 %v492_v11  ;;  %v547_v11 = vsel %vm246_vm0, %v434_v16, 0.0  ;;  %v576_v12 = vadd.f32 %v575_v63, %v447_v60  ;;  %v587_v16 = vsel %vm246_vm0, %v454_v18, 0.0 }
  0x6b   : > { %489 = vadd.xlane.f32.xlu0 %v488_v4  ;;  %v548_v4 = vadd.f32 %v547_v11, %v433_v24  ;;  %v3667_v11 = vld [vmem:[#allocation18_spill] sm:$0xff]  ;;  %v588_v32 = vadd.f32 %v587_v16, %v453_v20 }
  0x6c   : > { %v456_v27 = vmul.f32 %v3667_v11, %v3667_v11 }
  0x6e   : > { %501 = vadd.xlane.f32.xlu1 %v500_v13  ;;  %v556_v13 = vadd.f32 %v555_v28, %v437_v40 }
  0x6f   : > { %497 = vadd.xlane.f32.xlu0 %v496_v51  ;;  %v552_v51 = vadd.f32 %v551_v10, %v435_v43  ;;  %v591_v43 = vsel %vm246_vm0, %v456_v27, 0.0 }
  0x72   : > { %509 = vadd.xlane.f32.xlu1 %v508_v57  ;;  %v3656_v57 = vld [vmem:[#allocation7_spill] sm:$0xff] }
  0x73   : > { %505 = vadd.xlane.f32.xlu0 %v504_v1  ;;  %v444_v42 = vmul.f32 %v3656_v57, %v3656_v57  ;;  %v564_v1 = vadd.f32 %v563_v2, %v441_v56 }
  0x75   : > { %v567_v0 = vsel %vm246_vm0, %v444_v42, 0.0 }
  0x76   : > { %517 = vadd.xlane.f32.xlu1 %v516_v37  ;;  %v443_v37 = vmul.f32 %v3658_v47, %v3658_v47 }
  0x77   : > { %513 = vadd.xlane.f32.xlu0 %v512_v3  ;;  %v450_v3 = vmul.f32 %v3659_v50, %v3659_v50 }
  0x78   : > { %v568_v58 = vadd.f32 %v567_v0, %v443_v37 }
  0x7a   : > { %525 = vadd.xlane.f32.xlu1 %v524_v53  ;;  %v449_v53 = vmul.f32 %v3661_v55, %v3661_v55 }
  0x7b   : > { %521 = vadd.xlane.f32.xlu0 %v520_v15  ;;  %v579_v15 = vsel %vm246_vm0, %v450_v3, 0.0 }
  0x7e   : > { %533 = vadd.xlane.f32.xlu1 %v532_v19  ;;  %v3664_v19 = vld [vmem:[#allocation15_spill] sm:$0xff] }
  0x7f   : > { %529 = vadd.xlane.f32.xlu0 %v528_v41  ;;  %v452_v8 = vmul.f32 %v3664_v19, %v3664_v19  ;;  %v580_v41 = vadd.f32 %v579_v15, %v449_v53 }
  0x82   : > { %541 = vadd.xlane.f32.xlu1 %v540_v25  ;;  %v3666_v25 = vld [vmem:[#allocation17_spill] sm:$0xff] }
  0x83   : > { %537 = vadd.xlane.f32.xlu0 %v536_v23  ;;  %v458_v24 = vmul.f32 %v3666_v25, %v3666_v25  ;;  %v583_v23 = vsel %vm246_vm0, %v452_v8, 0.0 }
  0x84   : > { %v584_v26 = vadd.f32 %v583_v23, %v451_v17 }
  0x85   : > { %v595_v33 = vsel %vm246_vm0, %v458_v24, 0.0 }
  0x86   : > { %549 = vadd.xlane.f32.xlu1 %v548_v4  ;;  %v3668_v4 = vld [vmem:[#allocation19_spill] sm:$0xff]  ;;  %v596_v10 = vadd.f32 %v595_v33, %v457_v61 }
  0x87   : > { %545 = vadd.xlane.f32.xlu0 %v544_v7  ;;  %v455_v40 = vmul.f32 %v3668_v4, %v3668_v4  ;;  %v3669_v7 = vld [vmem:[#allocation20_spill] sm:$0xff] }
  0x88   : > { %v462_v28 = vmul.f32 %v3669_v7, %v3669_v7 }
  0x89   : > { %v592_v31 = vadd.f32 %v591_v43, %v455_v40 }
  0x8a   : > { %557 = vadd.xlane.f32.xlu1 %v556_v13  ;;  %v603_v49 = vsel %vm246_vm0, %v462_v28, 0.0  ;;  %v459_v13 = vmul.f32 %v2402_v9, %v2402_v9 }
  0x8b   : > { %553 = vadd.xlane.f32.xlu0 %v552_v51  ;;  %v604_v56 = vadd.f32 %v603_v49, %v461_v21 }
  0x8c   : > { %v600_v2 = vadd.f32 %v599_v34, %v459_v13 }
  0x8e   : > { %565 = vadd.xlane.f32.xlu1 %v564_v1 }
  0x8f   : > { %561 = vadd.xlane.f32.xlu0 %v560_v46 }
  0x92   : > { %573 = vadd.xlane.f32.xlu1 %v572_v14  ;;  %v2046_v14 = vmov 0  }
  0x93   : > { %569 = vadd.xlane.f32.xlu0 %v568_v58  ;;  %1891 = vset.pattern.permute.xlu1 %v2046_v14 }
  0x94   : > { %1890 = vset.pattern.permute.xlu0 %v2046_v14 }
  0x96   : > { %581 = vadd.xlane.f32.xlu1 %v580_v41 }
  0x97   : > { %577 = vadd.xlane.f32.xlu0 %v576_v12 }
  0x9a   : > { %589 = vadd.xlane.f32.xlu1 %v588_v32 }
  0x9b   : > { %585 = vadd.xlane.f32.xlu0 %v584_v26 }
  0x9e   : > { %597 = vadd.xlane.f32.xlu1 %v596_v10 }
  0x9f   : > { %593 = vadd.xlane.f32.xlu0 %v592_v31  ;;  %v258_v51 = vpop.xlane.xlu1 %257 }
  0xa0   : > { %v250_v36 = vpop.xlane.xlu0 %249  ;;  %v2634_v17 = vmul.f32 0.0051020407, %v258_v51 }
  0xa1   : > { %v2632_v22 = vmul.f32 0.0051020407, %v250_v36 }
  0xa2   : > { %605 = vadd.xlane.f32.xlu1 %v604_v56  ;;  %v681_v30 = vmul.f32 %v2634_v17, %v2634_v17 }
  0xa3   : > { %601 = vadd.xlane.f32.xlu0 %v600_v2  ;;  %v262_v59 = vpop.xlane.xlu1 %261  ;;  %v679_v40 = vmul.f32 %v2632_v22, %v2632_v22 }
  0xa4   : > { %v254_v38 = vpop.xlane.xlu0 %253  ;;  %v2636_v25 = vmul.f32 0.0051020407, %v262_v59 }
  0xa5   : > { %v2628_v12 = vmul.f32 0.0051020407, %v254_v38 }
  0xa6   : > { %v682_v48 = vmul.f32 %v2636_v25, %v2636_v25 }
  0xa7   : > { %v270_v45 = vpop.xlane.xlu1 %269  ;;  %v680_v61 = vmul.f32 %v2628_v12, %v2628_v12 }
  0xa8   : > { %v266_v6 = vpop.xlane.xlu0 %265  ;;  %v2638_v24 = vmul.f32 0.0051020407, %v270_v45 }
  0xa9   : > { %v2640_v23 = vmul.f32 0.0051020407, %v266_v6 }
  0xaa   : > { %v684_v10 = vmul.f32 %v2638_v24, %v2638_v24 }
  0xab   : > { %v278_v39 = vpop.xlane.xlu1 %277  ;;  %v683_v31 = vmul.f32 %v2640_v23, %v2640_v23 }
  0xac   : > { %v274_v57 = vpop.xlane.xlu0 %273  ;;  %v2642_v11 = vmul.f32 0.0051020407, %v278_v39 }
  0xad   : > { %v2644_v27 = vmul.f32 0.0051020407, %v274_v57 }
  0xae   : > { %v686_v49 = vmul.f32 %v2642_v11, %v2642_v11 }
  0xaf   : > { %v286_v42 = vpop.xlane.xlu1 %285  ;;  %v2668_v13 = vmul.f32 %v2644_v27, %v2644_v27 }
  0xb0   : > { %v282_v1 = vpop.xlane.xlu0 %281  ;;  %v2648_v26 = vmul.f32 0.0051020407, %v286_v42 }
  0xb1   : > { %v2652_v7 = vmul.f32 0.0051020407, %v282_v1 }
  0xb2   : > { %v2672_v51 = vmul.f32 %v2648_v26, %v2648_v26 }
  0xb3   : > { %v294_v29 = vpop.xlane.xlu1 %293  ;;  %v2678_v45 = vmul.f32 %v2652_v7, %v2652_v7 }
  0xb4   : > { %v290_v9 = vpop.xlane.xlu0 %289  ;;  %v2654_v28 = vmul.f32 0.0051020407, %v294_v29 }
  0xb5   : > { %v2674_v2 = vmul.f32 0.0051020407, %v290_v9 }
  0xb6   : > { %v2682_v6 = vmul.f32 %v2654_v28, %v2654_v28 }
  0xb7   : > { %v302_v44 = vpop.xlane.xlu1 %301 }
  0xb8   : > { %v298_v46 = vpop.xlane.xlu0 %297  ;;  %v2684_v42 = vmul.f32 0.0051020407, %v302_v44 }
  0xb9   : > { %v2686_v1 = vmul.f32 0.0051020407, %v298_v46 }
  0xbb   : > { %v2586_v5 = vpop.xlane.xlu1 %309 }
  0xbc   : > { %v2588_v47 = vpop.xlane.xlu0 %305  ;;  %v2689_v14 = vmul.f32 0.0051020407, %v2586_v5 }
  0xbf   : > { %v2590_v37 = vpop.xlane.xlu1 %317 }
  0xc0   : > { %v2592_v50 = vpop.xlane.xlu0 %313 }
  0xc3   : > { %v2594_v3 = vpop.xlane.xlu1 %325 }
  0xc4   : > { %v2596_v0 = vpop.xlane.xlu0 %321 }
  0xc7   : > { %v2598_v52 = vpop.xlane.xlu1 %333 }
  0xc8   : > { %v2600_v54 = vpop.xlane.xlu0 %329 }
  0xcb   : > { %v2602_v55 = vpop.xlane.xlu1 %341 }
  0xcc   : > { %v2604_v53 = vpop.xlane.xlu0 %337 }
  0xcf   : > { %v2606_v58 = vpop.xlane.xlu1 %349 }
  0xd0   : > { %v2608_v15 = vpop.xlane.xlu0 %345 }
  0xd3   : > { %v2610_v35 = vpop.xlane.xlu1 %357 }
  0xd4   : > { %v2612_v60 = vpop.xlane.xlu0 %353 }
  0xd7   : > { %v2614_v62 = vpop.xlane.xlu1 %365 }
  0xd8   : > { %v2616_v18 = vpop.xlane.xlu0 %361 }
  0xdb   : > { %v2618_v63 = vpop.xlane.xlu1 %373 }
  0xdc   : > { %v2620_v19 = vpop.xlane.xlu0 %369 }
  0xdf   : > { %v2622_v8 = vpop.xlane.xlu1 %381 }
  0xe0   : > { %v2624_v41 = vpop.xlane.xlu0 %377 }
  0xe3   : > { %v2626_v20 = vpop.xlane.xlu1 %389 }
  0xe4   : > { %v2630_v16 = vpop.xlane.xlu0 %385 }
  0xe7   : > { %v470_v32 = vpop.xlane.xlu1 %469 }
  0xe8   : > { %v644_v33 = vmul.f32 0.0051020407, %v470_v32  ;;  %v466_v4 = vpop.xlane.xlu0 %465  ;;  %v2692_v32 = vmul.f32 0.0051020407, %v2588_v47  ;;  %v2703_v47 = vmul.f32 %v2684_v42, %v2684_v42 }
  0xe9   : > { %v643_v43 = vmul.f32 0.0051020407, %v466_v4 }
  0xea   : > { %v716_v21 = vsub.f32 %v644_v33, %v680_v61 }
  0xeb   : > { %v715_v34 = vsub.f32 %v643_v43, %v679_v40  ;;  %v478_v56 = vpop.xlane.xlu1 %477  ;;  %v2696_v40 = vmul.f32 %v2674_v2, %v2674_v2 }
  0xec   : > { %v752_v36 = vmax.f32 %v716_v21, 0.0  ;;  %v646_v59 = vmul.f32 0.0051020407, %v478_v56  ;;  %v474_v38 = vpop.xlane.xlu0 %473  ;;  %v2699_v21 = vmul.f32 0.0051020407, %v2590_v37  ;;  %v2715_v37 = vmul.f32 %v2692_v32, %v2692_v32 }
  0xed   : > { %v751_v39 = vmax.f32 %v715_v34, 0.0  ;;  %v645_v57 = vmul.f32 0.0051020407, %v474_v38 }
  0xee   : > { %v824_v29 = vadd.f32 1e-05, %v752_v36  ;;  %v718_v9 = vsub.f32 %v646_v59, %v682_v48  ;;  %v2711_v36 = vmul.f32 %v2689_v14, %v2689_v14 }
  0xef   : > { %v823_v61 = vadd.f32 1e-05, %v751_v39  ;;  %v717_v33 = vsub.f32 %v645_v57, %v681_v30  ;;  %v486_v4 = vpop.xlane.xlu1 %485  ;;  %v2707_v30 = vmul.f32 %v2686_v1, %v2686_v1  ;;  %v2718_v57 = vmul.f32 0.0051020407, %v2592_v50 }
  0xf0   : > { %1894 = vrsqrt.f32 %v824_v29  ;;  %v754_v44 = vmax.f32 %v718_v9, 0.0  ;;  %v648_v43 = vmul.f32 0.0051020407, %v486_v4  ;;  %v482_v46 = vpop.xlane.xlu0 %481 }
  0xf1   : > { %1896 = vrsqrt.f32 %v823_v61  ;;  %v753_v5 = vmax.f32 %v717_v33, 0.0  ;;  %v647_v48 = vmul.f32 0.0051020407, %v482_v46  ;;  %v2732_v46 = vmul.f32 0.0051020407, %v2598_v52 }
  0xf2   : > { %v826_v34 = vadd.f32 1e-05, %v754_v44  ;;  %v720_v56 = vsub.f32 %v648_v43, %v684_v10  ;;  %v2722_v10 = vmul.f32 %v2699_v21, %v2699_v21  ;;  %v2726_v44 = vmul.f32 0.0051020407, %v2594_v3 }
  0xf3   : > { %v825_v59 = vadd.f32 1e-05, %v753_v5  ;;  %v719_v38 = vsub.f32 %v647_v48, %v683_v31  ;;  %v494_v39 = vpop.xlane.xlu1 %493  ;;  %v2729_v31 = vmul.f32 0.0051020407, %v2596_v0  ;;  %3671 = vst [vmem:[#allocation2_spill] sm:$0xff] %v2732_v46 }
  0xf4   : > { %1898 = vrsqrt.f32 %v826_v34  ;;  %v756_v29 = vmax.f32 %v720_v56, 0.0  ;;  %v650_v9 = vmul.f32 0.0051020407, %v494_v39  ;;  %v490_v61 = vpop.xlane.xlu0 %489  ;;  %v2735_v5 = vmul.f32 0.0051020407, %v2600_v54 }
  0xf5   : > { %1900 = vrsqrt.f32 %v825_v59  ;;  %v755_v33 = vmax.f32 %v719_v38, 0.0  ;;  %v649_v4 = vmul.f32 0.0051020407, %v490_v61  ;;  %v2740_v59 = vmul.f32 %v2718_v57, %v2718_v57 }
  0xf6   : > { %v828_v50 = vadd.f32 1e-05, %v756_v29  ;;  %v722_v43 = vsub.f32 %v650_v9, %v686_v49  ;;  %3672 = vst [vmem:[#allocation3_spill] sm:$0xff] %v2735_v5  ;;  %v2748_v52 = vmul.f32 0.0051020407, %v2602_v55  ;;  %v2756_v39 = vmul.f32 %v2729_v31, %v2729_v31 }
  0xf7   : > { %v827_v48 = vadd.f32 1e-05, %v755_v33  ;;  %v721_v34 = vsub.f32 %v649_v4, %v2668_v13  ;;  %v502_v56 = vpop.xlane.xlu1 %501  ;;  %v2752_v13 = vmul.f32 %v2726_v44, %v2726_v44  ;;  %v2761_v61 = vmul.f32 %v2732_v46, %v2732_v46 }
  0xf8   : > { %1902 = vrsqrt.f32 %v828_v50  ;;  %v758_v3 = vmax.f32 %v722_v43, 0.0  ;;  %v652_v0 = vmul.f32 0.0051020407, %v502_v56  ;;  %v498_v38 = vpop.xlane.xlu0 %497  ;;  %3673 = vst [vmem:[#allocation4_spill] sm:$0xff] %v2748_v52  ;;  %v2765_v55 = vmul.f32 %v2735_v5, %v2735_v5  ;;  %v2769_v43 = vld [vmem:[%s2745_s19 + $0x8] sm:$0xff] }
  0xf9   : > { %1904 = vrsqrt.f32 %v827_v48  ;;  %v757_v54 = vmax.f32 %v721_v34, 0.0  ;;  %v651_v49 = vmul.f32 0.0051020407, %v498_v38  ;;  %3674 = vst [vmem:[#allocation5_spill] sm:$0xff] %v2769_v43  ;;  %v2772_v48 = vmul.f32 0.0051020407, %v2604_v53 }
  0xfa   : > { %v830_v29 = vadd.f32 1e-05, %v758_v3  ;;  %v724_v9 = vsub.f32 %v652_v0, %v2672_v51  ;;  %v2775_v3 = vld [vmem:[%s2745_s19] sm:$0xff]  ;;  %v2779_v38 = vmul.f32 %v2748_v52, %v2748_v52  ;;  %v2782_v46 = vmul.f32 0.0051020407, %v2606_v58 }
  0xfb   : > { %v829_v33 = vadd.f32 1e-05, %v757_v54  ;;  %v723_v4 = vsub.f32 %v651_v49, %v2678_v45  ;;  %v510_v50 = vpop.xlane.xlu1 %509  ;;  %3675 = vst [vmem:[#allocation6_spill] sm:$0xff] %v2775_v3 }
  0xfc   : > { %1906 = vrsqrt.f32 %v830_v29  ;;  %v760_v34 = vmax.f32 %v724_v9, 0.0  ;;  %v654_v51 = vmul.f32 0.0051020407, %v510_v50  ;;  %v506_v56 = vpop.xlane.xlu0 %505  ;;  %v2789_v50 = vmul.f32 0.0051020407, %v2608_v15 }
  0xfd   : > { %v1895_v0 = vpop.eup %1894  ;;  %1908 = vrsqrt.f32 %v829_v33  ;;  %v759_v54 = vmax.f32 %v723_v4, 0.0  ;;  %v653_v45 = vmul.f32 0.0051020407, %v506_v56 }
  0xfe   : > { %v1897_v49 = vpop.eup %1896  ;;  %v832_v53 = vadd.f32 1e-05, %v760_v34  ;;  %v726_v29 = vsub.f32 %v654_v51, %v2682_v6  ;;  %v2786_v9 = vmul.f32 %v1895_v0, %v2769_v43  ;;  %v2798_v51 = vld [vmem:[%s2745_s19 + $0x10] sm:$0xff] }
  0xff   : > { %v831_v52 = vadd.f32 1e-05, %v759_v54  ;;  %v725_v33 = vsub.f32 %v653_v45, %v2696_v40  ;;  %v518_v4 = vpop.xlane.xlu1 %517  ;;  %v2793_v56 = vmul.f32 %v1897_v49, %v2775_v3  ;;  %3677 = vst [vmem:[#allocation8_spill] sm:$0xff] %v2798_v51  ;;  %v2803_v54 = vld [vmem:[%s2745_s19 + $0x18] sm:$0xff]  ;;  %v2807_v49 = vmul.f32 %v2772_v48, %v2772_v48 }
 0x100   : > { %3676 = vst [vmem:[#allocation7_spill] sm:$0xff] %v2786_v9  ;;  %1910 = vrsqrt.f32 %v832_v53  ;;  %v762_v58 = vmax.f32 %v726_v29, 0.0  ;;  %v656_v5 = vmul.f32 0.0051020407, %v518_v4  ;;  %v514_v34 = vpop.xlane.xlu0 %513  ;;  %v932_v6 = vmul.f32 %v2786_v9, %v2628_v12  ;;  %3678 = vst [vmem:[#allocation9_spill] sm:$0xff] %v2803_v54  ;;  %v2831_v9 = vld [vmem:[%s2745_s19 + $0x28] sm:$0xff] }
 0x101   : > { %v1899_v0 = vpop.eup %1898  ;;  %1912 = vrsqrt.f32 %v831_v52  ;;  %v761_v15 = vmax.f32 %v725_v33, 0.0  ;;  %v655_v43 = vmul.f32 0.0051020407, %v514_v34  ;;  %v931_v40 = vmul.f32 %v2793_v56, %v2632_v22  ;;  %3680 = vst [vmem:[#allocation11_spill] sm:$0xff] %v2831_v9 }
 0x102   : > { %v1901_v45 = vpop.eup %1900  ;;  %v2811_v53 = vmul.f32 %v2782_v46, %v2782_v46  ;;  %v834_v12 = vadd.f32 1e-05, %v762_v58  ;;  %v728_v52 = vsub.f32 %v656_v5, %v2703_v47  ;;  %1005 = vrot.lane.b32.xlu1 %v932_v6, %s2047_s20  ;;  %v2817_v22 = vmul.f32 %v2789_v50, %v2789_v50  ;;  %v2828_v6 = vld [vmem:[%s2745_s19 + $0x20] sm:$0xff] }
 0x103   : > { %v833_v29 = vadd.f32 1e-05, %v761_v15  ;;  %v727_v33 = vsub.f32 %v655_v43, %v2707_v30  ;;  %1003 = vrot.lane.b32.xlu0 %v931_v40, %s2047_s20  ;;  %v526_v4 = vpop.xlane.xlu1 %525  ;;  %v2822_v34 = vmul.f32 %v1901_v45, %v2798_v51  ;;  %v2825_v5 = vmul.f32 %v1899_v0, %v2803_v54  ;;  %3679 = vst [vmem:[#allocation10_spill] sm:$0xff] %v2828_v6 }
 0x104   : > { %1914 = vrsqrt.f32 %v834_v12  ;;  %v764_v58 = vmax.f32 %v728_v52, 0.0  ;;  %v658_v3 = vmul.f32 0.0051020407, %v526_v4  ;;  %v522_v47 = vpop.xlane.xlu0 %521  ;;  %v2836_v12 = vmul.f32 0.0051020407, %v2610_v35 }
 0x105   : > { %v1903_v15 = vpop.eup %1902  ;;  %1916 = vrsqrt.f32 %v833_v29  ;;  %v763_v30 = vmax.f32 %v727_v33, 0.0  ;;  %v657_v43 = vmul.f32 0.0051020407, %v522_v47  ;;  %v933_v40 = vmul.f32 %v2822_v34, %v2634_v17 }
 0x106   : > { %v1905_v45 = vpop.eup %1904  ;;  %v2839_v52 = vmul.f32 0.0051020407, %v2612_v60  ;;  %v836_v0 = vadd.f32 1e-05, %v764_v58  ;;  %v730_v4 = vsub.f32 %v658_v3, %v2711_v36  ;;  %v2848_v33 = vmul.f32 %v1903_v15, %v2831_v9  ;;  %v2853_v3 = vld [vmem:[%s2745_s19 + $0x30] sm:$0xff] }
 0x107   : > { %v835_v54 = vadd.f32 1e-05, %v763_v30  ;;  %v729_v51 = vsub.f32 %v657_v43, %v2715_v37  ;;  %1007 = vrot.lane.b32.xlu1 %v933_v40, %s2047_s20  ;;  %v534_v29 = vpop.xlane.xlu1 %533  ;;  %v2845_v17 = vmul.f32 %v1905_v45, %v2828_v6  ;;  %v934_v36 = vmul.f32 %v2825_v5, %v2636_v25  ;;  %v2858_v40 = vld [vmem:[%s2745_s19 + $0x38] sm:$0xff] }
 0x108   : > { %1918 = vrsqrt.f32 %v836_v0  ;;  %v766_v35 = vmax.f32 %v730_v4, 0.0  ;;  %v660_v60 = vmul.f32 0.0051020407, %v534_v29  ;;  %v530_v47 = vpop.xlane.xlu0 %529  ;;  %3681 = vst [vmem:[#allocation12_spill] sm:$0xff] %v2858_v40  ;;  %v2862_v45 = vmul.f32 %v2836_v12, %v2836_v12 }
 0x109   : > { %v1907_v37 = vpop.eup %1906  ;;  %1920 = vrsqrt.f32 %v835_v54  ;;  %v765_v58 = vmax.f32 %v729_v51, 0.0  ;;  %v659_v30 = vmul.f32 0.0051020407, %v530_v47  ;;  %v935_v43 = vmul.f32 %v2845_v17, %v2640_v23 }
 0x10a   : > { %v1909_v15 = vpop.eup %1908  ;;  %v2866_v25 = vmul.f32 %v2839_v52, %v2839_v52  ;;  %v838_v0 = vadd.f32 1e-05, %v766_v35  ;;  %v732_v51 = vsub.f32 %v660_v60, %v2722_v10  ;;  %v936_v29 = vmul.f32 %v2848_v33, %v2638_v24  ;;  %v2881_v60 = vld [vmem:[%s2745_s19 + $0x40] sm:$0xff] }
 0x10b   : > { %v837_v54 = vadd.f32 1e-05, %v765_v58  ;;  %v731_v4 = vsub.f32 %v659_v30, %v2740_v59  ;;  %1009 = vrot.lane.b32.xlu1 %v934_v36, %s2047_s20  ;;  %1011 = vrot.lane.b32.xlu0 %v935_v43, %s2047_s20  ;;  %v542_v23 = vpop.xlane.xlu1 %541  ;;  %v2875_v47 = vmul.f32 %v1909_v15, %v2853_v3  ;;  %v2878_v10 = vmul.f32 %v1907_v37, %v2858_v40  ;;  %v2884_v59 = vld [vmem:[%s2745_s19 + $0x48] sm:$0xff] }
 0x10c   : > { %1922 = vrsqrt.f32 %v838_v0  ;;  %v768_v9 = vmax.f32 %v732_v51, 0.0  ;;  %v662_v6 = vmul.f32 0.0051020407, %v542_v23  ;;  %v538_v35 = vpop.xlane.xlu0 %537  ;;  %3682 = vst [vmem:[#allocation13_spill] sm:$0xff] %v2884_v59  ;;  %v2889_v15 = vmul.f32 0.0051020407, %v2614_v62 }
 0x10d   : > { %v1911_v36 = vpop.eup %1910  ;;  %1924 = vrsqrt.f32 %v837_v54  ;;  %v767_v58 = vmax.f32 %v731_v4, 0.0  ;;  %v661_v30 = vmul.f32 0.0051020407, %v538_v35  ;;  %v937_v24 = vmul.f32 %v2875_v47, %v2644_v27 }
 0x10e   : > { %v1913_v43 = vpop.eup %1912  ;;  %v2892_v0 = vmul.f32 0.0051020407, %v2616_v18  ;;  %v840_v37 = vadd.f32 1e-05, %v768_v9  ;;  %v734_v51 = vsub.f32 %v662_v6, %v2752_v13  ;;  %v2902_v62 = vmul.f32 %v1911_v36, %v2884_v59 }
 0x10f   : > { %v839_v23 = vadd.f32 1e-05, %v767_v58  ;;  %v733_v40 = vsub.f32 %v661_v30, %v2756_v39  ;;  %1013 = vrot.lane.b32.xlu1 %v936_v29, %s2047_s20  ;;  %1015 = vrot.lane.b32.xlu0 %v937_v24, %s2047_s20  ;;  %v550_v27 = vpop.xlane.xlu1 %549  ;;  %v2899_v54 = vmul.f32 %v1913_v43, %v2881_v60  ;;  %v938_v13 = vmul.f32 %v2878_v10, %v2642_v11  ;;  %v2907_v39 = vld [vmem:[%s2745_s19 + $0x50] sm:$0xff]  ;;  %v2912_v30 = vld [vmem:[%s2745_s19 + $0x58] sm:$0xff] }
 0x110   : > { %1926 = vrsqrt.f32 %v840_v37  ;;  %v770_v18 = vmax.f32 %v734_v51, 0.0  ;;  %v664_v9 = vmul.f32 0.0051020407, %v550_v27  ;;  %v546_v4 = vpop.xlane.xlu0 %545  ;;  %3683 = vst [vmem:[#allocation14_spill] sm:$0xff] %v2912_v30  ;;  %v2916_v24 = vmul.f32 %v2889_v15, %v2889_v15 }
 0x111   : > { %v1915_v6 = vpop.eup %1914  ;;  %1928 = vrsqrt.f32 %v839_v23  ;;  %v769_v29 = vmax.f32 %v733_v40, 0.0  ;;  %v663_v35 = vmul.f32 0.0051020407, %v546_v4  ;;  %v939_v58 = vmul.f32 %v2899_v54, %v2652_v7 }
 0x112   : > { %v1917_v36 = vpop.eup %1916  ;;  %v2920_v11 = vmul.f32 %v2892_v0, %v2892_v0  ;;  %v842_v43 = vadd.f32 1e-05, %v770_v18  ;;  %v736_v40 = vsub.f32 %v664_v9, %v2761_v61  ;;  %v940_v23 = vmul.f32 %v2902_v62, %v2648_v26  ;;  %v2935_v9 = vld [vmem:[%s2745_s19 + $0x60] sm:$0xff] }
 0x113   : > { %v841_v37 = vadd.f32 1e-05, %v769_v29  ;;  %v735_v51 = vsub.f32 %v663_v35, %v2765_v55  ;;  %1017 = vrot.lane.b32.xlu1 %v938_v13, %s2047_s20  ;;  %1019 = vrot.lane.b32.xlu0 %v939_v58, %s2047_s20  ;;  %v558_v7 = vpop.xlane.xlu1 %557  ;;  %v2929_v27 = vmul.f32 %v1917_v36, %v2907_v39  ;;  %v2932_v61 = vmul.f32 %v1915_v6, %v2912_v30  ;;  %v2938_v55 = vld [vmem:[%s2745_s19 + $0x68] sm:$0xff] }
 0x114   : > { %1930 = vrsqrt.f32 %v842_v43  ;;  %v772_v4 = vmax.f32 %v736_v40, 0.0  ;;  %v666_v59 = vmul.f32 0.0051020407, %v558_v7  ;;  %v554_v18 = vpop.xlane.xlu0 %553  ;;  %3684 = vst [vmem:[#allocation15_spill] sm:$0xff] %v2938_v55  ;;  %v2943_v36 = vmul.f32 0.0051020407, %v2618_v63 }
 0x115   : > { %v1919_v13 = vpop.eup %1918  ;;  %1932 = vrsqrt.f32 %v841_v37  ;;  %v771_v29 = vmax.f32 %v735_v51, 0.0  ;;  %v665_v35 = vmul.f32 0.0051020407, %v554_v18  ;;  %v941_v26 = vmul.f32 %v2929_v27, %v2674_v2 }
 0x116   : > { %v1921_v58 = vpop.eup %1920  ;;  %v2946_v43 = vmul.f32 0.0051020407, %v2620_v19  ;;  %v844_v6 = vadd.f32 1e-05, %v772_v4  ;;  %v738_v40 = vsub.f32 %v666_v59, %v2779_v38  ;;  %v2956_v63 = vmul.f32 %v1919_v13, %v2938_v55 }
 0x117   : > { %v843_v7 = vadd.f32 1e-05, %v771_v29  ;;  %v737_v30 = vsub.f32 %v665_v35, %v2807_v49  ;;  %1021 = vrot.lane.b32.xlu1 %v940_v23, %s2047_s20  ;;  %1023 = vrot.lane.b32.xlu0 %v941_v26, %s2047_s20  ;;  %v566_v2 = vpop.xlane.xlu1 %565  ;;  %v2953_v37 = vmul.f32 %v1921_v58, %v2935_v9  ;;  %v942_v38 = vmul.f32 %v2932_v61, %v2654_v28  ;;  %v2961_v49 = vld [vmem:[%s2745_s19 + $0x70] sm:$0xff]  ;;  %v2966_v35 = vld [vmem:[%s2745_s19 + $0x78] sm:$0xff] }
 0x118   : > { %1934 = vrsqrt.f32 %v844_v6  ;;  %v774_v19 = vmax.f32 %v738_v40, 0.0  ;;  %v668_v51 = vmul.f32 0.0051020407, %v566_v2  ;;  %v562_v4 = vpop.xlane.xlu0 %561  ;;  %3685 = vst [vmem:[#allocation16_spill] sm:$0xff] %v2966_v35  ;;  %v2970_v26 = vmul.f32 %v2943_v36, %v2943_v36 }
 0x119   : > { %v1923_v59 = vpop.eup %1922  ;;  %1936 = vrsqrt.f32 %v843_v7  ;;  %v773_v23 = vmax.f32 %v737_v30, 0.0  ;;  %v667_v18 = vmul.f32 0.0051020407, %v562_v4  ;;  %v943_v29 = vmul.f32 %v2953_v37, %v2686_v1 }
 0x11a   : > { %v1925_v13 = vpop.eup %1924  ;;  %v2974_v28 = vmul.f32 %v2946_v43, %v2946_v43  ;;  %v846_v58 = vadd.f32 1e-05, %v774_v19  ;;  %v740_v30 = vsub.f32 %v668_v51, %v2811_v53  ;;  %v944_v7 = vmul.f32 %v2956_v63, %v2684_v42  ;;  %v2989_v51 = vld [vmem:[%s2745_s19 + $0x80] sm:$0xff] }
 0x11b   : > { %v845_v6 = vadd.f32 1e-05, %v773_v23  ;;  %v739_v40 = vsub.f32 %v667_v18, %v2817_v22  ;;  %1025 = vrot.lane.b32.xlu1 %v942_v38, %s2047_s20  ;;  %1027 = vrot.lane.b32.xlu0 %v943_v29, %s2047_s20  ;;  %v574_v1 = vpop.xlane.xlu1 %573  ;;  %v2983_v2 = vmul.f32 %v1925_v13, %v2961_v49  ;;  %v2986_v53 = vmul.f32 %v1923_v59, %v2966_v35  ;;  %v2992_v22 = vld [vmem:[%s2745_s19 + $0x88] sm:$0xff] }
 0x11c   : > { %1938 = vrsqrt.f32 %v846_v58  ;;  %v776_v4 = vmax.f32 %v740_v30, 0.0  ;;  %v670_v55 = vmul.f32 0.0051020407, %v574_v1  ;;  %v570_v19 = vpop.xlane.xlu0 %569  ;;  %3686 = vst [vmem:[#allocation17_spill] sm:$0xff] %v2992_v22  ;;  %v2997_v13 = vmul.f32 0.0051020407, %v2622_v8 }
 0x11d   : > { %v1927_v38 = vpop.eup %1926  ;;  %1940 = vrsqrt.f32 %v845_v6  ;;  %v775_v23 = vmax.f32 %v739_v40, 0.0  ;;  %v669_v18 = vmul.f32 0.0051020407, %v570_v19  ;;  %v945_v42 = vmul.f32 %v2983_v2, %v2692_v32 }
 0x11e   : > { %v1929_v29 = vpop.eup %1928  ;;  %v3000_v58 = vmul.f32 0.0051020407, %v2624_v41  ;;  %v848_v59 = vadd.f32 1e-05, %v776_v4  ;;  %v742_v30 = vsub.f32 %v670_v55, %v2862_v45  ;;  %v3010_v8 = vmul.f32 %v1927_v38, %v2992_v22 }
 0x11f   : > { %v847_v1 = vadd.f32 1e-05, %v775_v23  ;;  %v741_v35 = vsub.f32 %v669_v18, %v2866_v25  ;;  %1029 = vrot.lane.b32.xlu1 %v944_v7, %s2047_s20  ;;  %1031 = vrot.lane.b32.xlu0 %v945_v42, %s2047_s20  ;;  %v582_v32 = vpop.xlane.xlu1 %581  ;;  %v3007_v6 = vmul.f32 %v1929_v29, %v2989_v51  ;;  %v946_v45 = vmul.f32 %v2986_v53, %v2689_v14  ;;  %v3015_v25 = vld [vmem:[%s2745_s19 + $0x90] sm:$0xff]  ;;  %v3020_v18 = vld [vmem:[%s2745_s19 + $0x98] sm:$0xff] }
 0x120   : > { %1942 = vrsqrt.f32 %v848_v59  ;;  %v778_v41 = vmax.f32 %v742_v30, 0.0  ;;  %v672_v40 = vmul.f32 0.0051020407, %v582_v32  ;;  %v578_v4 = vpop.xlane.xlu0 %577  ;;  %3687 = vst [vmem:[#allocation18_spill] sm:$0xff] %v3015_v25  ;;  %3688 = vst [vmem:[#allocation19_spill] sm:$0xff] %v3020_v18  ;;  %v712_v42 = vmul.f32 %v2997_v13, %v2997_v13 }
 0x121   : > { %v1931_v55 = vpop.eup %1930  ;;  %1944 = vrsqrt.f32 %v847_v1  ;;  %v777_v7 = vmax.f32 %v741_v35, 0.0  ;;  %v671_v19 = vmul.f32 0.0051020407, %v578_v4  ;;  %v947_v23 = vmul.f32 %v3007_v6, %v2718_v57 }
 0x122   : > { %v1933_v38 = vpop.eup %1932  ;;  %v3026_v29 = vmul.f32 %v3000_v58, %v3000_v58  ;;  %v850_v14 = vadd.f32 1e-05, %v778_v41  ;;  %v744_v59 = vsub.f32 %v672_v40, %v2916_v24  ;;  %v948_v1 = vmul.f32 %v3010_v8, %v2699_v21  ;;  %v3041_v40 = vld [vmem:[%s2745_s19 + $0xa0] sm:$0xff] }
 0x123   : > { %v849_v35 = vadd.f32 1e-05, %v777_v7  ;;  %v743_v30 = vsub.f32 %v671_v19, %v2920_v11  ;;  %1033 = vrot.lane.b32.xlu1 %v946_v45, %s2047_s20  ;;  %1035 = vrot.lane.b32.xlu0 %v947_v23, %s2047_s20  ;;  %v590_v57 = vpop.xlane.xlu1 %589  ;;  %v3035_v32 = vmul.f32 %v1933_v38, %v3015_v25  ;;  %v3038_v24 = vmul.f32 %v1931_v55, %v3020_v18  ;;  %v3044_v11 = vld [vmem:[%s2745_s19 + $0xa8] sm:$0xff] }
 0x124   : > { %1946 = vrsqrt.f32 %v850_v14  ;;  %v780_v4 = vmax.f32 %v744_v59, 0.0  ;;  %v674_v22 = vmul.f32 0.0051020407, %v590_v57  ;;  %v586_v41 = vpop.xlane.xlu0 %585  ;;  %3689 = vst [vmem:[#allocation20_spill] sm:$0xff] %v3041_v40  ;;  %3690 = vst [vmem:[#allocation21_spill] sm:$0xff] %v3044_v11 }
 0x125   : > { %v1935_v45 = vpop.eup %1934  ;;  %1948 = vrsqrt.f32 %v849_v35  ;;  %v779_v7 = vmax.f32 %v743_v30, 0.0  ;;  %v673_v19 = vmul.f32 0.0051020407, %v586_v41  ;;  %v949_v21 = vmul.f32 %v3035_v32, %v2729_v31 }
 0x126   : > { %v1937_v23 = vpop.eup %1936  ;;  %v3049_v38 = vmul.f32 0.0051020407, %v2626_v20  ;;  %v3052_v14 = vmul.f32 0.0051020407, %v2630_v16  ;;  %v852_v55 = vadd.f32 1e-05, %v780_v4  ;;  %v746_v59 = vsub.f32 %v674_v22, %v2970_v26 }
 0x127   : > { %v851_v57 = vadd.f32 1e-05, %v779_v7  ;;  %v745_v18 = vsub.f32 %v673_v19, %v2974_v28  ;;  %1037 = vrot.lane.b32.xlu1 %v948_v1, %s2047_s20  ;;  %1039 = vrot.lane.b32.xlu0 %v949_v21, %s2047_s20  ;;  %v598_v31 = vpop.xlane.xlu1 %597  ;;  %v3059_v35 = vmul.f32 %v1937_v23, %v3041_v40  ;;  %v3062_v20 = vmul.f32 %v1935_v45, %v3044_v11  ;;  %v3067_v28 = vld [vmem:[%s2745_s19 + $0xb0] sm:$0xff]  ;;  %v3691_v7 = vld [vmem:[#allocation3_spill] sm:$0xff]  ;;  %v3072_v21 = vld [vmem:[%s2745_s19 + $0xb8] sm:$0xff] }
 0x128   : > { %1950 = vrsqrt.f32 %v852_v55  ;;  %v782_v16 = vmax.f32 %v746_v59, 0.0  ;;  %v676_v30 = vmul.f32 0.0051020407, %v598_v31  ;;  %v594_v4 = vpop.xlane.xlu0 %593  ;;  %v950_v26 = vmul.f32 %v3038_v24, %v2726_v44 }
 0x129   : > { %v1939_v22 = vpop.eup %1938  ;;  %1952 = vrsqrt.f32 %v851_v57  ;;  %v781_v1 = vmax.f32 %v745_v18, 0.0  ;;  %v675_v41 = vmul.f32 0.0051020407, %v594_v4  ;;  %v951_v19 = vmul.f32 %v3059_v35, %v3691_v7  ;;  %v3692_v4 = vld [vmem:[#allocation2_spill] sm:$0xff] }
 0x12a   : > { %v1941_v45 = vpop.eup %1940  ;;  %v714_v23 = vmul.f32 %v3049_v38, %v3049_v38  ;;  %v713_v55 = vmul.f32 %v3052_v14, %v3052_v14  ;;  %v854_v44 = vadd.f32 1e-05, %v782_v16  ;;  %v748_v59 = vsub.f32 %v676_v30, %v712_v42 }
 0x12b   : > { %v853_v31 = vadd.f32 1e-05, %v781_v1  ;;  %v747_v57 = vsub.f32 %v675_v41, %v3026_v29  ;;  %1041 = vrot.lane.b32.xlu1 %v950_v26, %s2047_s20  ;;  %1043 = vrot.lane.b32.xlu0 %v951_v19, %s2047_s20  ;;  %v606_v18 = vpop.xlane.xlu1 %605  ;;  %v952_v7 = vmul.f32 %v3062_v20, %v3692_v4  ;;  %v3084_v11 = vmul.f32 %v1941_v45, %v3067_v28  ;;  %v3090_v29 = vld [vmem:[%s2745_s19 + $0xc0] sm:$0xff] }
 0x12c   : > { %1954 = vrsqrt.f32 %v854_v44  ;;  %v784_v40 = vmax.f32 %v748_v59, 0.0  ;;  %v678_v25 = vmul.f32 0.0051020407, %v606_v18  ;;  %v602_v16 = vpop.xlane.xlu0 %601  ;;  %v3087_v42 = vmul.f32 %v1939_v22, %v3072_v21  ;;  %v3095_v44 = vld [vmem:[%s2745_s19 + $0xc8] sm:$0xff] }
 0x12d   : > { %v1943_v30 = vpop.eup %1942  ;;  %1956 = vrsqrt.f32 %v853_v31  ;;  %v783_v26 = vmax.f32 %v747_v57, 0.0  ;;  %v677_v1 = vmul.f32 0.0051020407, %v602_v16  ;;  %v953_v41 = vmul.f32 %v3084_v11, %v2772_v48  ;;  %v3693_v57 = vld [vmem:[#allocation4_spill] sm:$0xff] }
 0x12e   : > { %v1945_v19 = vpop.eup %1944  ;;  %v856_v45 = vadd.f32 1e-05, %v784_v40  ;;  %v750_v4 = vsub.f32 %v678_v25, %v714_v23  ;;  %v954_v48 = vmul.f32 %v3087_v42, %v3693_v57  ;;  %v3105_v40 = vld [vmem:[%s2745_s19 + $0xd0] sm:$0xff] }
 0x12f   : > { %v855_v59 = vadd.f32 1e-05, %v783_v26  ;;  %v749_v18 = vsub.f32 %v677_v1, %v713_v55  ;;  %1045 = vrot.lane.b32.xlu1 %v952_v7, %s2047_s20  ;;  %1047 = vrot.lane.b32.xlu0 %v953_v41, %s2047_s20  ;;  %v3100_v22 = vmul.f32 %v1945_v19, %v3090_v29  ;;  %v3110_v7 = vmul.f32 %v1943_v30, %v3095_v44  ;;  %v3113_v1 = vld [vmem:[%s2745_s19 + $0xd8] sm:$0xff] }
 0x130   : > { %1958 = vrsqrt.f32 %v856_v45  ;;  %v786_v31 = vmax.f32 %v750_v4, 0.0  ;;  %v3121_v45 = vld [vmem:[%s2745_s19 + $0xe0] sm:$0xff] }
 0x131   : > { %v1947_v25 = vpop.eup %1946  ;;  %1960 = vrsqrt.f32 %v855_v59  ;;  %v785_v23 = vmax.f32 %v749_v18, 0.0  ;;  %v955_v55 = vmul.f32 %v3100_v22, %v2789_v50  ;;  %v956_v30 = vmul.f32 %v3110_v7, %v2782_v46 }
 0x132   : > { %v1949_v16 = vpop.eup %1948  ;;  %v858_v26 = vadd.f32 1e-05, %v786_v31  ;;  %v3128_v59 = vmul.f32 %v1947_v25, %v3113_v1  ;;  %v3131_v31 = vld [vmem:[%s2745_s19 + $0xe8] sm:$0xff] }
 0x133   : > { %v857_v41 = vadd.f32 1e-05, %v785_v23  ;;  %1049 = vrot.lane.b32.xlu1 %v954_v48, %s2047_s20  ;;  %1051 = vrot.lane.b32.xlu0 %v955_v55, %s2047_s20  ;;  %v3118_v19 = vmul.f32 %v1949_v16, %v3105_v40  ;;  %3694 = vst [vmem:[#allocation3_spill] sm:$0xff] %v3131_v31  ;;  %v3139_v48 = vld [vmem:[%s2745_s19 + $0xf0] sm:$0xff]  ;;  %v3149_v16 = vld [vmem:[%s2745_s19 + $0xf8] sm:$0xff] }
 0x134   : > { %1962 = vrsqrt.f32 %v858_v26  ;;  %3695 = vst [vmem:[#allocation2_spill] sm:$0xff] %v3149_v16 }
 0x135   : > { %v1951_v50 = vpop.eup %1950  ;;  %1964 = vrsqrt.f32 %v857_v41  ;;  %v957_v4 = vmul.f32 %v3118_v19, %v2839_v52  ;;  %v958_v52 = vmul.f32 %v3128_v59, %v2836_v12  ;;  %v3157_v41 = vld [vmem:[%s2745_s19 + $0x100] sm:$0xff] }
 0x136   : > { %v1953_v18 = vpop.eup %1952  ;;  %v3146_v23 = vmul.f32 %v1951_v50, %v3131_v31  ;;  %v3180_v31 = vld [vmem:[%s2745_s19 + $0x118] sm:$0xff] }
 0x137   : > { %1053 = vrot.lane.b32.xlu1 %v956_v30, %s2047_s20  ;;  %1055 = vrot.lane.b32.xlu0 %v957_v4, %s2047_s20  ;;  %v3136_v57 = vmul.f32 %v1953_v18, %v3121_v45  ;;  %v3165_v18 = vld [vmem:[%s2745_s19 + $0x108] sm:$0xff] }
 0x139   : > { %v1955_v46 = vpop.eup %1954  ;;  %v959_v25 = vmul.f32 %v3136_v57, %v2892_v0  ;;  %v960_v0 = vmul.f32 %v3146_v23, %v2889_v15 }
 0x13a   : > { %v1957_v55 = vpop.eup %1956  ;;  %v926_v30 = vmul.f32 %v1955_v46, %v3149_v16 }
 0x13b   : > { %1057 = vrot.lane.b32.xlu1 %v958_v52, %s2047_s20  ;;  %1059 = vrot.lane.b32.xlu0 %v959_v25, %s2047_s20  ;;  %v3154_v26 = vmul.f32 %v1957_v55, %v3139_v48  ;;  %v3173_v25 = vld [vmem:[%s2745_s19 + $0x110] sm:$0xff] }
 0x13c   : > { %v962_v15 = vmul.f32 %v926_v30, %v2943_v36 }
 0x13d   : > { %v1959_v12 = vpop.eup %1958  ;;  %v961_v50 = vmul.f32 %v3154_v26, %v2946_v43 }
 0x13e   : > { %v1961_v4 = vpop.eup %1960  ;;  %v928_v46 = vmul.f32 %v1959_v12, %v3165_v18  ;;  %v3696_v12 = vld [vmem:[#allocation7_spill] sm:$0xff] }
 0x13f   : > { %1061 = vrot.lane.b32.xlu1 %v960_v0, %s2047_s20  ;;  %1063 = vrot.lane.b32.xlu0 %v961_v50, %s2047_s20  ;;  %v3170_v52 = vmul.f32 %v1961_v4, %v3157_v41 }
 0x140   : > { %v964_v50 = vmul.f32 %v928_v46, %v2997_v13  ;;  %v3697_v13 = vld [vmem:[#allocation5_spill] sm:$0xff] }
 0x141   : > { %v1963_v55 = vpop.eup %1962  ;;  %v963_v43 = vmul.f32 %v3170_v52, %v3000_v58 }
 0x142   : > { %v1965_v16 = vpop.eup %1964  ;;  %v930_v36 = vmul.f32 %v1963_v55, %v3180_v31  ;;  %v3702_v55 = vld [vmem:[#allocation11_spill] sm:$0xff] }
 0x143   : > { %1065 = vrot.lane.b32.xlu1 %v962_v15, %s2047_s20  ;;  %1067 = vrot.lane.b32.xlu0 %v963_v43, %s2047_s20  ;;  %v929_v0 = vmul.f32 %v1965_v16, %v3173_v25 }
 0x144   : > { %v966_v58 = vmul.f32 %v930_v36, %v3049_v38 }
 0x145   : > { %v965_v4 = vmul.f32 %v929_v0, %v3052_v14  ;;  %v3699_v14 = vld [vmem:[#allocation10_spill] sm:$0xff] }
 0x147   : > { %1069 = vrot.lane.b32.xlu1 %v964_v50, %s2047_s20  ;;  %1071 = vrot.lane.b32.xlu0 %v965_v4, %s2047_s20 }
 0x14b   : > { %1073 = vrot.lane.b32.xlu1 %v966_v58, %s2047_s20  ;;  %1149 = vperm.xlu0 %1890, %v2793_v56  }
 0x14f   : > { %1154 = vperm.xlu1 %1891, %v3696_v12   ;;  %1164 = vperm.xlu0 %1890, %v2825_v5  }
 0x153   : > { %1159 = vperm.xlu1 %1891, %v2822_v34   ;;  %1174 = vperm.xlu0 %1890, %v2848_v33  }
 0x157   : > { %1169 = vperm.xlu1 %1891, %v2845_v17   ;;  %1184 = vperm.xlu0 %1890, %v2878_v10  }
 0x15b   : > { %1179 = vperm.xlu1 %1891, %v2875_v47   ;;  %1194 = vperm.xlu0 %1890, %v2902_v62  }
 0x15f   : > { %1189 = vperm.xlu1 %1891, %v2899_v54   ;;  %1204 = vperm.xlu0 %1890, %v2932_v61  }
 0x163   : > { %1199 = vperm.xlu1 %1891, %v2929_v27   ;;  %1214 = vperm.xlu0 %1890, %v2956_v63  }
 0x167   : > { %1209 = vperm.xlu1 %1891, %v2953_v37   ;;  %1224 = vperm.xlu0 %1890, %v2986_v53  }
 0x16b   : > { %1219 = vperm.xlu1 %1891, %v2983_v2   ;;  %1234 = vperm.xlu0 %1890, %v3010_v8   ;;  %v2048_v8 = vmov 1  }
 0x16f   : > { %1229 = vperm.xlu1 %1891, %v3007_v6   ;;  %1244 = vperm.xlu0 %1890, %v3038_v24  }
 0x173   : > { %1239 = vperm.xlu1 %1891, %v3035_v32   ;;  %1254 = vperm.xlu0 %1890, %v3062_v20  }
 0x174   : > { %v1006_v56 = vpop.permute.xlu1 %1005 }
 0x175   : > { %v1004_v34 = vpop.permute.xlu0 %1003  ;;  %v1112_v6 = vsub.f32 %v3697_v13, %v1006_v56 }
 0x177   : > { %1249 = vperm.xlu1 %1891, %v3059_v35   ;;  %1264 = vperm.xlu0 %1890, %v3087_v42  }
 0x179   : > { %v1008_v5 = vpop.permute.xlu1 %1007 }
 0x17b   : > { %1259 = vperm.xlu1 %1891, %v3084_v11   ;;  %1274 = vperm.xlu0 %1890, %v3110_v7   ;;  %v3698_v11 = vld [vmem:[#allocation6_spill] sm:$0xff] }
 0x17c   : > { %v1111_v38 = vsub.f32 %v3698_v11, %v1004_v34  ;;  %v3705_v34 = vld [vmem:[#allocation14_spill] sm:$0xff] }
 0x17d   : > { %v1010_v17 = vpop.permute.xlu1 %1009  ;;  %v1012_v33 = vpop.permute.xlu0 %1011 }
 0x17e   : > { %v1115_v35 = vsub.f32 %v3699_v14, %v1012_v33 }
 0x17f   : > { %1269 = vperm.xlu1 %1891, %v3100_v22   ;;  %1284 = vperm.xlu0 %1890, %v3128_v59   ;;  %v3700_v22 = vld [vmem:[#allocation8_spill] sm:$0xff] }
 0x180   : > { %v1113_v7 = vsub.f32 %v3700_v22, %v1008_v5 }
 0x181   : > { %v1014_v47 = vpop.permute.xlu1 %1013  ;;  %v1016_v10 = vpop.permute.xlu0 %1015 }
 0x182   : > { %v1116_v15 = vsub.f32 %v3702_v55, %v1014_v47  ;;  %v3706_v47 = vld [vmem:[#allocation15_spill] sm:$0xff] }
 0x183   : > { %1279 = vperm.xlu1 %1891, %v3118_v19   ;;  %1294 = vperm.xlu0 %1890, %v3146_v23   ;;  %v1117_v19 = vsub.f32 %v2853_v3, %v1016_v10  ;;  %v3701_v23 = vld [vmem:[#allocation9_spill] sm:$0xff]  ;;  %v3707_v10 = vld [vmem:[#allocation18_spill] sm:$0xff] }
 0x184   : > { %v1114_v16 = vsub.f32 %v3701_v23, %v1010_v17 }
 0x185   : > { %v1018_v54 = vpop.permute.xlu1 %1017  ;;  %v1020_v62 = vpop.permute.xlu0 %1019 }
 0x187   : > { %1289 = vperm.xlu1 %1891, %v3136_v57   ;;  %1304 = vperm.xlu0 %1890, %v926_v30  }
 0x189   : > { %v1022_v27 = vpop.permute.xlu1 %1021  ;;  %v1024_v61 = vpop.permute.xlu0 %1023 }
 0x18a   : > { %v1121_v43 = vsub.f32 %v2907_v39, %v1024_v61  ;;  %v3709_v61 = vld [vmem:[#allocation20_spill] sm:$0xff] }
 0x18b   : > { %1299 = vperm.xlu1 %1891, %v3154_v26   ;;  %1314 = vperm.xlu0 %1890, %v928_v46   ;;  %v1119_v26 = vsub.f32 %v2881_v60, %v1020_v62  ;;  %v3704_v60 = vld [vmem:[#allocation13_spill] sm:$0xff] }
 0x18c   : > { %v1120_v58 = vsub.f32 %v3704_v60, %v1022_v27  ;;  %v3708_v27 = vld [vmem:[#allocation16_spill] sm:$0xff] }
 0x18d   : > { %v1026_v37 = vpop.permute.xlu1 %1025  ;;  %v1028_v63 = vpop.permute.xlu0 %1027 }
 0x18e   : > { %v1123_v4 = vsub.f32 %v2935_v9, %v1028_v63  ;;  %v1122_v39 = vsub.f32 %v3705_v34, %v1026_v37  ;;  %v3710_v37 = vld [vmem:[#allocation17_spill] sm:$0xff] }
 0x18f   : > { %1309 = vperm.xlu1 %1891, %v3170_v52   ;;  %1324 = vperm.xlu0 %1890, %v930_v36  }
 0x191   : > { %v1030_v2 = vpop.permute.xlu1 %1029  ;;  %v1032_v53 = vpop.permute.xlu0 %1031 }
 0x192   : > { %v1125_v12 = vsub.f32 %v2961_v49, %v1032_v53  ;;  %v1124_v9 = vsub.f32 %v3706_v47, %v1030_v2  ;;  %v3711_v2 = vld [vmem:[#allocation19_spill] sm:$0xff] }
 0x193   : > { %1319 = vperm.xlu1 %1891, %v929_v0   ;;  %1893 = vset.pattern.permute.xlu0 %v2048_v8  ;;  %v3703_v0 = vld [vmem:[#allocation12_spill] sm:$0xff] }
 0x194   : > { %1406 = vperm.xlu0 %1893, %v1112_v6   ;;  %v1118_v50 = vsub.f32 %v3703_v0, %v1018_v54 }
 0x195   : > { %v1034_v32 = vpop.permute.xlu1 %1033  ;;  %v1036_v24 = vpop.permute.xlu0 %1035 }
 0x196   : > { %v1127_v5 = vsub.f32 %v2989_v51, %v1036_v24  ;;  %v1126_v49 = vsub.f32 %v3708_v27, %v1034_v32  ;;  %v3712_v32 = vld [vmem:[#allocation21_spill] sm:$0xff] }
 0x197   : > { %1892 = vset.pattern.permute.xlu1 %v2048_v8 }
 0x198   : > { %1401 = vperm.xlu1 %1892, %v1111_v38   ;;  %1421 = vperm.xlu0 %1893, %v1115_v35  }
 0x199   : > { %v1038_v20 = vpop.permute.xlu1 %1037  ;;  %v1040_v42 = vpop.permute.xlu0 %1039 }
 0x19a   : > { %v1129_v54 = vsub.f32 %v3707_v10, %v1040_v42  ;;  %v1128_v51 = vsub.f32 %v3710_v37, %v1038_v20  ;;  %v1967_v37 = vld [vmem:[%s2080_s15 + $0x18] sm:$0xff] }
 0x19c   : > { %1411 = vperm.xlu1 %1892, %v1113_v7   ;;  %1431 = vperm.xlu0 %1893, %v1117_v19  }
 0x19d   : > { %v1042_v59 = vpop.permute.xlu1 %1041  ;;  %v1044_v57 = vpop.permute.xlu0 %1043 }
 0x19e   : > { %v1131_v63 = vsub.f32 %v3709_v61, %v1044_v57  ;;  %v1130_v24 = vsub.f32 %v3711_v2, %v1042_v59 }
 0x1a0   : > { %1416 = vperm.xlu1 %1892, %v1114_v16   ;;  %1441 = vperm.xlu0 %1893, %v1119_v26   ;;  %v3713_v16 = vld [vmem:[#allocation3_spill] sm:$0xff] }
 0x1a1   : > { %v1046_v30 = vpop.permute.xlu1 %1045  ;;  %v1048_v52 = vpop.permute.xlu0 %1047 }
 0x1a2   : > { %v1133_v13 = vsub.f32 %v3067_v28, %v1048_v52  ;;  %v1132_v14 = vsub.f32 %v3712_v32, %v1046_v30  ;;  %v3714_v52 = vld [vmem:[#allocation2_spill] sm:$0xff] }
 0x1a4   : > { %1426 = vperm.xlu1 %1892, %v1116_v15   ;;  %1451 = vperm.xlu0 %1893, %v1121_v43  }
 0x1a5   : > { %v1050_v46 = vpop.permute.xlu1 %1049  ;;  %v1052_v3 = vpop.permute.xlu0 %1051 }
 0x1a6   : > { %v1135_v11 = vsub.f32 %v3090_v29, %v1052_v3  ;;  %v1134_v28 = vsub.f32 %v3072_v21, %v1050_v46 }
 0x1a8   : > { %1436 = vperm.xlu1 %1892, %v1118_v50   ;;  %1461 = vperm.xlu0 %1893, %v1123_v4  }
 0x1a9   : > { %v1054_v36 = vpop.permute.xlu1 %1053  ;;  %v1056_v56 = vpop.permute.xlu0 %1055 }
 0x1aa   : > { %v1137_v35 = vsub.f32 %v3105_v40, %v1056_v56  ;;  %v1136_v29 = vsub.f32 %v3095_v44, %v1054_v36 }
 0x1ac   : > { %1446 = vperm.xlu1 %1892, %v1120_v58   ;;  %1471 = vperm.xlu0 %1893, %v1125_v12  }
 0x1ad   : > { %v1058_v17 = vpop.permute.xlu1 %1057  ;;  %v1060_v33 = vpop.permute.xlu0 %1059 }
 0x1ae   : > { %v1139_v20 = vsub.f32 %v3121_v45, %v1060_v33  ;;  %v1138_v40 = vsub.f32 %v3113_v1, %v1058_v17 }
 0x1b0   : > { %1456 = vperm.xlu1 %1892, %v1122_v39   ;;  %1481 = vperm.xlu0 %1893, %v1127_v5  }
 0x1b1   : > { %v1062_v62 = vpop.permute.xlu1 %1061  ;;  %v1064_v53 = vpop.permute.xlu0 %1063 }
 0x1b2   : > { %v1141_v19 = vsub.f32 %v3139_v48, %v1064_v53  ;;  %v1140_v26 = vsub.f32 %v3713_v16, %v1062_v62  ;;  %v1972_v16 = vld [vmem:[%s2080_s15 + $0x20] sm:$0xff] }
 0x1b4   : > { %1466 = vperm.xlu1 %1892, %v1124_v9   ;;  %1491 = vperm.xlu0 %1893, %v1129_v54  }
 0x1b5   : > { %v1066_v6 = vpop.permute.xlu1 %1065  ;;  %v1068_v8 = vpop.permute.xlu0 %1067 }
 0x1b6   : > { %v1143_v21 = vsub.f32 %v3157_v41, %v1068_v8  ;;  %v1142_v55 = vsub.f32 %v3714_v52, %v1066_v6  ;;  %v1974_v52 = vld [vmem:[%s2080_s15 + $0x60] sm:$0xff] }
 0x1b8   : > { %1476 = vperm.xlu1 %1892, %v1126_v49   ;;  %1501 = vperm.xlu0 %1893, %v1131_v63   ;;  %v1966_v63 = vld [vmem:[%s2080_s15 + $0x10] sm:$0xff] }
 0x1b9   : > { %v1070_v38 = vpop.permute.xlu1 %1069  ;;  %v1072_v42 = vpop.permute.xlu0 %1071 }
 0x1ba   : > { %v1145_v44 = vsub.f32 %v3173_v25, %v1072_v42  ;;  %v1144_v15 = vsub.f32 %v3165_v18, %v1070_v38  ;;  %v1969_v38 = vld [vmem:[%s2080_s15 + $0x8] sm:$0xff] }
 0x1bb   : > { %v1971_v42 = vld [vmem:[%s2080_s15 + $0x48] sm:$0xff] }
 0x1bc   : > { %1486 = vperm.xlu1 %1892, %v1128_v51   ;;  %1511 = vperm.xlu0 %1893, %v1133_v13  }
 0x1bd   : > { %v1074_v22 = vpop.permute.xlu1 %1073 }
 0x1be   : > { %v1146_v25 = vsub.f32 %v3180_v31, %v1074_v22 }
 0x1c0   : > { %1496 = vperm.xlu1 %1892, %v1130_v24   ;;  %1521 = vperm.xlu0 %1893, %v1135_v11   ;;  %v1968_v24 = vld [vmem:[%s2080_s15] sm:$0xff] }
 0x1c4   : > { %1506 = vperm.xlu1 %1892, %v1132_v14   ;;  %1531 = vperm.xlu0 %1893, %v1137_v35   ;;  %v1970_v14 = vld [vmem:[%s2080_s15 + $0x40] sm:$0xff] }
 0x1c6   : > { %v3251_v7 = vpop.permute.xlu0 %1149 }
 0x1c7   : > { %v1327_v11 = vmul.f32 %v1968_v24, %v3251_v7  ;;  %v1328_v32 = vmul.f32 %v1969_v38, %v3251_v7 }
 0x1c8   : > { %1516 = vperm.xlu1 %1892, %v1134_v28   ;;  %1541 = vperm.xlu0 %1893, %v1139_v20  }
 0x1ca   : > { %v1155_v59 = vpop.permute.xlu1 %1154  ;;  %v3255_v57 = vpop.permute.xlu0 %1164 }
 0x1cb   : > { %v1329_v53 = vmul.f32 %v1966_v63, %v1155_v59  ;;  %v1330_v51 = vmul.f32 %v1967_v37, %v1155_v59 }
 0x1cc   : > { %1526 = vperm.xlu1 %1892, %v1136_v29   ;;  %1551 = vperm.xlu0 %1893, %v1141_v19  }
 0x1ce   : > { %v3259_v23 = vpop.permute.xlu1 %1159  ;;  %v3261_v45 = vpop.permute.xlu0 %1174 }
 0x1d0   : > { %1536 = vperm.xlu1 %1892, %v1138_v40   ;;  %1561 = vperm.xlu0 %1893, %v1143_v21  }
 0x1d2   : > { %v1170_v48 = vpop.permute.xlu1 %1169  ;;  %v3265_v30 = vpop.permute.xlu0 %1184 }
 0x1d3   : > { %v1335_v35 = vmul.f32 %v1970_v14, %v1170_v48  ;;  %v1336_v28 = vmul.f32 %v1971_v42, %v1170_v48 }
 0x1d4   : > { %1546 = vperm.xlu1 %1892, %v1140_v26   ;;  %1571 = vperm.xlu0 %1893, %v1145_v44   ;;  %v1331_v26 = vmul.f32 %v1972_v16, %v3259_v23  ;;  %v1973_v44 = vld [vmem:[%s2080_s15 + $0x28] sm:$0xff] }
 0x1d5   : > { %v1332_v48 = vmul.f32 %v1973_v44, %v3259_v23 }
 0x1d6   : > { %v3268_v1 = vpop.permute.xlu1 %1179  ;;  %v3270_v41 = vpop.permute.xlu0 %1194 }
 0x1d8   : > { %1556 = vperm.xlu1 %1892, %v1142_v55   ;;  %v1339_v55 = vmul.f32 %v1974_v52, %v3268_v1 }
 0x1da   : > { %v3273_v43 = vpop.permute.xlu1 %1189  ;;  %v3275_v46 = vpop.permute.xlu0 %1204 }
 0x1dc   : > { %1566 = vperm.xlu1 %1892, %v1144_v15   ;;  %v1975_v15 = vld [vmem:[%s2080_s15 + $0x68] sm:$0xff] }
 0x1de   : > { %v3278_v3 = vpop.permute.xlu1 %1199  ;;  %v3280_v0 = vpop.permute.xlu0 %1214 }
 0x1e0   : > { %1576 = vperm.xlu1 %1892, %v1146_v25   ;;  %v1340_v25 = vmul.f32 %v1975_v15, %v3268_v1 }
 0x1e2   : > { %v3282_v50 = vpop.permute.xlu1 %1209  ;;  %v3284_v4 = vpop.permute.xlu0 %1224 }
 0x1e6   : > { %v3286_v36 = vpop.permute.xlu1 %1219  ;;  %v3288_v60 = vpop.permute.xlu0 %1234 }
 0x1ea   : > { %v3290_v18 = vpop.permute.xlu1 %1229  ;;  %v3292_v58 = vpop.permute.xlu0 %1244 }
 0x1ee   : > { %v3294_v12 = vpop.permute.xlu1 %1239  ;;  %v3296_v31 = vpop.permute.xlu0 %1254 }
 0x1f2   : > { %v3298_v56 = vpop.permute.xlu1 %1249  ;;  %v3300_v34 = vpop.permute.xlu0 %1264 }
 0x1f6   : > { %v3302_v39 = vpop.permute.xlu1 %1259  ;;  %v3304_v5 = vpop.permute.xlu0 %1274 }
 0x1fa   : > { %v3306_v17 = vpop.permute.xlu1 %1269  ;;  %v3308_v33 = vpop.permute.xlu0 %1284 }
 0x1fe   : > { %v3310_v47 = vpop.permute.xlu1 %1279  ;;  %v3312_v9 = vpop.permute.xlu0 %1294 }
 0x202   : > { %v3314_v10 = vpop.permute.xlu1 %1289  ;;  %v3316_v54 = vpop.permute.xlu0 %1304 }
 0x206   : > { %v3318_v62 = vpop.permute.xlu1 %1299  ;;  %v3320_v27 = vpop.permute.xlu0 %1314 }
 0x20a   : > { %v3322_v49 = vpop.permute.xlu1 %1309  ;;  %v3324_v61 = vpop.permute.xlu0 %1324 }
 0x20e   : > { %v3328_v13 = vpop.permute.xlu1 %1319 }
 0x20f   : > { %v1407_v6 = vpop.permute.xlu0 %1406 }
 0x210   : > { %v1581_v8 = vadd.f32 %v1407_v6, %v1329_v53  ;;  %v1582_v2 = vadd.f32 %v1407_v6, %v1330_v51 }
 0x212   : > { %v1653_v20 = vmax.f32 %v1581_v8, 0.0  ;;  %v1654_v22 = vmax.f32 %v1582_v2, 0.0 }
 0x213   : > { %v1402_v29 = vpop.permute.xlu1 %1401  ;;  %v1422_v7 = vpop.permute.xlu0 %1421 }
 0x214   : > { %1725 = vst [vmem:[%s3339_s23 + $0x10] sm:$0xff] %v1653_v20  ;;  %1726 = vst.msk [vmem:[%s3339_s23 + $0x18] sm:$0xff] %vm246_vm0, %v1654_v22  ;;  %v1579_v19 = vadd.f32 %v1402_v29, %v1327_v11  ;;  %v1580_v59 = vadd.f32 %v1402_v29, %v1328_v32  ;;  %v1587_v40 = vadd.f32 %v1422_v7, %v1335_v35  ;;  %v1976_v11 = vld [vmem:[%s2080_s15 + $0x30] sm:$0xff]  ;;  %v1977_v32 = vld [vmem:[%s2080_s15 + $0x38] sm:$0xff] }
 0x215   : > { %v1588_v21 = vadd.f32 %v1422_v7, %v1336_v28  ;;  %v1333_v38 = vmul.f32 %v1976_v11, %v3255_v57  ;;  %v1334_v14 = vmul.f32 %v1977_v32, %v3255_v57  ;;  %v1978_v35 = vld [vmem:[%s2080_s15 + $0x80] sm:$0xff]  ;;  %v1979_v28 = vld [vmem:[%s2080_s15 + $0x88] sm:$0xff] }
 0x216   : > { %v1651_v63 = vmax.f32 %v1579_v19, 0.0  ;;  %v1652_v53 = vmax.f32 %v1580_v59, 0.0  ;;  %v1659_v37 = vmax.f32 %v1587_v40, 0.0  ;;  %v1343_v42 = vmul.f32 %v1978_v35, %v3273_v43 }
 0x217   : > { %v1660_v51 = vmax.f32 %v1588_v21, 0.0  ;;  %v1412_v6 = vpop.permute.xlu1 %1411  ;;  %v1432_v8 = vpop.permute.xlu0 %1431  ;;  %v1344_v20 = vmul.f32 %v1979_v28, %v3273_v43 }
 0x218   : > { %1723 = vst [vmem:[%s3339_s23] sm:$0xff] %v1651_v63  ;;  %1724 = vst.msk [vmem:[%s3339_s23 + $0x8] sm:$0xff] %vm246_vm0, %v1652_v53  ;;  %v1583_v23 = vadd.f32 %v1412_v6, %v1331_v26  ;;  %v1584_v2 = vadd.f32 %v1412_v6, %v1332_v48  ;;  %v1591_v24 = vadd.f32 %v1432_v8, %v1339_v55  ;;  %v1980_v26 = vld [vmem:[%s2080_s15 + $0x50] sm:$0xff]  ;;  %v1981_v48 = vld [vmem:[%s2080_s15 + $0x58] sm:$0xff] }
 0x219   : > { %1731 = vst [vmem:[%s3339_s23 + $0x40] sm:$0xff] %v1659_v37  ;;  %1732 = vst.msk [vmem:[%s3339_s23 + $0x48] sm:$0xff] %vm246_vm0, %v1660_v51  ;;  %v1592_v1 = vadd.f32 %v1432_v8, %v1340_v25  ;;  %v1337_v44 = vmul.f32 %v1980_v26, %v3261_v45  ;;  %v1338_v52 = vmul.f32 %v1981_v48, %v3261_v45  ;;  %v1982_v55 = vld [vmem:[%s2080_s15 + $0xa0] sm:$0xff]  ;;  %v1983_v25 = vld [vmem:[%s2080_s15 + $0xa8] sm:$0xff] }
 0x21a   : > { %v1655_v22 = vmax.f32 %v1583_v23, 0.0  ;;  %v1656_v29 = vmax.f32 %v1584_v2, 0.0  ;;  %v1663_v7 = vmax.f32 %v1591_v24, 0.0  ;;  %v1347_v15 = vmul.f32 %v1982_v55, %v3278_v3 }
 0x21b   : > { %v1664_v19 = vmax.f32 %v1592_v1, 0.0  ;;  %v1417_v59 = vpop.permute.xlu1 %1416  ;;  %v1442_v40 = vpop.permute.xlu0 %1441  ;;  %v1348_v63 = vmul.f32 %v1983_v25, %v3278_v3  ;;  %v1984_v1 = vld [vmem:[%s2080_s15 + $0x70] sm:$0xff] }
 0x21c   : > { %1727 = vst [vmem:[%s3339_s23 + $0x20] sm:$0xff] %v1655_v22  ;;  %1728 = vst.msk [vmem:[%s3339_s23 + $0x28] sm:$0xff] %vm246_vm0, %v1656_v29  ;;  %v1585_v57 = vadd.f32 %v1417_v59, %v1333_v38  ;;  %v1586_v21 = vadd.f32 %v1417_v59, %v1334_v14  ;;  %v1595_v16 = vadd.f32 %v1442_v40, %v1343_v42  ;;  %v1985_v38 = vld [vmem:[%s2080_s15 + $0x78] sm:$0xff]  ;;  %v1986_v14 = vld [vmem:[%s2080_s15 + $0xc0] sm:$0xff] }
 0x21d   : > { %1735 = vst [vmem:[%s3339_s23 + $0x60] sm:$0xff] %v1663_v7  ;;  %1736 = vst.msk [vmem:[%s3339_s23 + $0x68] sm:$0xff] %vm246_vm0, %v1664_v19  ;;  %v1596_v43 = vadd.f32 %v1442_v40, %v1344_v20  ;;  %v1341_v11 = vmul.f32 %v1984_v1, %v3265_v30  ;;  %v1342_v32 = vmul.f32 %v1985_v38, %v3265_v30  ;;  %v1987_v42 = vld [vmem:[%s2080_s15 + $0xc8] sm:$0xff] }
 0x21e   : > { %v1657_v53 = vmax.f32 %v1585_v57, 0.0  ;;  %v1658_v37 = vmax.f32 %v1586_v21, 0.0  ;;  %v1667_v51 = vmax.f32 %v1595_v16, 0.0  ;;  %v1351_v35 = vmul.f32 %v1986_v14, %v3282_v50  ;;  %v1988_v21 = vld [vmem:[%s2080_s15 + $0x90] sm:$0xff] }
 0x21f   : > { %v1668_v6 = vmax.f32 %v1596_v43, 0.0  ;;  %v1427_v8 = vpop.permute.xlu1 %1426  ;;  %v1452_v23 = vpop.permute.xlu0 %1451  ;;  %v1352_v28 = vmul.f32 %v1987_v42, %v3282_v50  ;;  %v1345_v16 = vmul.f32 %v1988_v21, %v3270_v41  ;;  %v1989_v43 = vld [vmem:[%s2080_s15 + $0x98] sm:$0xff] }
 0x220   : > { %1729 = vst [vmem:[%s3339_s23 + $0x30] sm:$0xff] %v1657_v53  ;;  %1730 = vst.msk [vmem:[%s3339_s23 + $0x38] sm:$0xff] %vm246_vm0, %v1658_v37  ;;  %v1589_v45 = vadd.f32 %v1427_v8, %v1337_v44  ;;  %v1590_v2 = vadd.f32 %v1427_v8, %v1338_v52  ;;  %v1599_v24 = vadd.f32 %v1452_v23, %v1347_v15  ;;  %v1990_v44 = vld [vmem:[%s2080_s15 + $0xe0] sm:$0xff]  ;;  %v1991_v52 = vld [vmem:[%s2080_s15 + $0xe8] sm:$0xff] }
 0x221   : > { %1739 = vst [vmem:[%s3339_s23 + $0x80] sm:$0xff] %v1667_v51  ;;  %1740 = vst.msk [vmem:[%s3339_s23 + $0x88] sm:$0xff] %vm246_vm0, %v1668_v6  ;;  %v1600_v3 = vadd.f32 %v1452_v23, %v1348_v63  ;;  %v1346_v26 = vmul.f32 %v1989_v43, %v3270_v41  ;;  %v1355_v48 = vmul.f32 %v1990_v44, %v3286_v36  ;;  %v1992_v23 = vld [vmem:[%s2080_s15 + $0xb0] sm:$0xff] }
 0x222   : > { %v1661_v20 = vmax.f32 %v1589_v45, 0.0  ;;  %v1662_v22 = vmax.f32 %v1590_v2, 0.0  ;;  %v1671_v29 = vmax.f32 %v1599_v24, 0.0  ;;  %v1356_v55 = vmul.f32 %v1991_v52, %v3286_v36  ;;  %v1993_v2 = vld [vmem:[%s2080_s15 + $0xb8] sm:$0xff] }
 0x223   : > { %v1672_v7 = vmax.f32 %v1600_v3, 0.0  ;;  %v1437_v19 = vpop.permute.xlu1 %1436  ;;  %v1462_v59 = vpop.permute.xlu0 %1461  ;;  %v1349_v45 = vmul.f32 %v1992_v23, %v3275_v46  ;;  %v1350_v24 = vmul.f32 %v1993_v2, %v3275_v46  ;;  %v1994_v3 = vld [vmem:[%s2080_s15 + $0x100] sm:$0xff] }
 0x224   : > { %1733 = vst [vmem:[%s3339_s23 + $0x50] sm:$0xff] %v1661_v20  ;;  %1734 = vst.msk [vmem:[%s3339_s23 + $0x58] sm:$0xff] %vm246_vm0, %v1662_v22  ;;  %v1593_v30 = vadd.f32 %v1437_v19, %v1341_v11  ;;  %v1594_v40 = vadd.f32 %v1437_v19, %v1342_v32  ;;  %v1603_v57 = vadd.f32 %v1462_v59, %v1351_v35  ;;  %v1995_v11 = vld [vmem:[%s2080_s15 + $0x108] sm:$0xff] }
 0x225   : > { %1743 = vst [vmem:[%s3339_s23 + $0xa0] sm:$0xff] %v1671_v29  ;;  %1744 = vst.msk [vmem:[%s3339_s23 + $0xa8] sm:$0xff] %vm246_vm0, %v1672_v7  ;;  %v1604_v50 = vadd.f32 %v1462_v59, %v1352_v28  ;;  %v1359_v1 = vmul.f32 %v1994_v3, %v3290_v18  ;;  %v1360_v38 = vmul.f32 %v1995_v11, %v3290_v18  ;;  %v1996_v7 = vld [vmem:[%s2080_s15 + $0xd0] sm:$0xff]  ;;  %v1997_v59 = vld [vmem:[%s2080_s15 + $0xd8] sm:$0xff] }
 0x226   : > { %v1665_v15 = vmax.f32 %v1593_v30, 0.0  ;;  %v1666_v25 = vmax.f32 %v1594_v40, 0.0  ;;  %v1675_v63 = vmax.f32 %v1603_v57, 0.0  ;;  %v1353_v19 = vmul.f32 %v1996_v7, %v3280_v0  ;;  %v1998_v40 = vld [vmem:[%s2080_s15 + $0x120] sm:$0xff] }
 0x227   : > { %v1676_v53 = vmax.f32 %v1604_v50, 0.0  ;;  %v1447_v37 = vpop.permute.xlu1 %1446  ;;  %v1472_v51 = vpop.permute.xlu0 %1471  ;;  %v1354_v30 = vmul.f32 %v1997_v59, %v3280_v0  ;;  %v1363_v57 = vmul.f32 %v1998_v40, %v3294_v12  ;;  %v1999_v50 = vld [vmem:[%s2080_s15 + $0x128] sm:$0xff] }
 0x228   : > { %1737 = vst [vmem:[%s3339_s23 + $0x70] sm:$0xff] %v1665_v15  ;;  %1738 = vst.msk [vmem:[%s3339_s23 + $0x78] sm:$0xff] %vm246_vm0, %v1666_v25  ;;  %v1597_v41 = vadd.f32 %v1447_v37, %v1345_v16  ;;  %v1598_v6 = vadd.f32 %v1447_v37, %v1346_v26  ;;  %v1607_v8 = vadd.f32 %v1472_v51, %v1355_v48  ;;  %v2000_v25 = vld [vmem:[%s2080_s15 + $0xf0] sm:$0xff] }
 0x229   : > { %1747 = vst [vmem:[%s3339_s23 + $0xc0] sm:$0xff] %v1675_v63  ;;  %1748 = vst.msk [vmem:[%s3339_s23 + $0xc8] sm:$0xff] %vm246_vm0, %v1676_v53  ;;  %v1608_v36 = vadd.f32 %v1472_v51, %v1356_v55  ;;  %v1364_v21 = vmul.f32 %v1999_v50, %v3294_v12  ;;  %v1357_v63 = vmul.f32 %v2000_v25, %v3284_v4  ;;  %v2001_v53 = vld [vmem:[%s2080_s15 + $0xf8] sm:$0xff]  ;;  %v2002_v51 = vld [vmem:[%s2080_s15 + $0x140] sm:$0xff] }
 0x22a   : > { %v1669_v32 = vmax.f32 %v1597_v41, 0.0  ;;  %v1670_v14 = vmax.f32 %v1598_v6, 0.0  ;;  %v1679_v35 = vmax.f32 %v1607_v8, 0.0  ;;  %v1358_v37 = vmul.f32 %v2001_v53, %v3284_v4  ;;  %v2003_v6 = vld [vmem:[%s2080_s15 + $0x148] sm:$0xff] }
 0x22b   : > { %v1680_v42 = vmax.f32 %v1608_v36, 0.0  ;;  %v1457_v28 = vpop.permute.xlu1 %1456  ;;  %v1482_v20 = vpop.permute.xlu0 %1481  ;;  %v1367_v41 = vmul.f32 %v2002_v51, %v3298_v56  ;;  %v1368_v8 = vmul.f32 %v2003_v6, %v3298_v56 }
 0x22c   : > { %1741 = vst [vmem:[%s3339_s23 + $0x90] sm:$0xff] %v1669_v32  ;;  %1742 = vst.msk [vmem:[%s3339_s23 + $0x98] sm:$0xff] %vm246_vm0, %v1670_v14  ;;  %v1601_v46 = vadd.f32 %v1457_v28, %v1349_v45  ;;  %v1602_v22 = vadd.f32 %v1457_v28, %v1350_v24  ;;  %v1611_v29 = vadd.f32 %v1482_v20, %v1359_v1  ;;  %v2005_v14 = vld [vmem:[%s2080_s15 + $0x118] sm:$0xff] }
 0x22d   : > { %1751 = vst [vmem:[%s3339_s23 + $0xe0] sm:$0xff] %v1679_v35  ;;  %1752 = vst.msk [vmem:[%s3339_s23 + $0xe8] sm:$0xff] %vm246_vm0, %v1680_v42  ;;  %v1612_v18 = vadd.f32 %v1482_v20, %v1360_v38  ;;  %v2004_v38 = vld [vmem:[%s2080_s15 + $0x110] sm:$0xff]  ;;  %v1362_v35 = vmul.f32 %v2005_v14, %v3288_v60  ;;  %v2006_v42 = vld [vmem:[%s2080_s15 + $0x160] sm:$0xff] }
 0x22e   : > { %v1673_v16 = vmax.f32 %v1601_v46, 0.0  ;;  %v1674_v43 = vmax.f32 %v1602_v22, 0.0  ;;  %v1683_v26 = vmax.f32 %v1611_v29, 0.0  ;;  %v1361_v32 = vmul.f32 %v2004_v38, %v3288_v60  ;;  %v2007_v20 = vld [vmem:[%s2080_s15 + $0x168] sm:$0xff] }
 0x22f   : > { %v1684_v44 = vmax.f32 %v1612_v18, 0.0  ;;  %v1467_v48 = vpop.permute.xlu1 %1466  ;;  %v1492_v52 = vpop.permute.xlu0 %1491  ;;  %v1371_v28 = vmul.f32 %v2006_v42, %v3302_v39  ;;  %v1372_v46 = vmul.f32 %v2007_v20, %v3302_v39 }
 0x230   : > { %1745 = vst [vmem:[%s3339_s23 + $0xb0] sm:$0xff] %v1673_v16  ;;  %1746 = vst.msk [vmem:[%s3339_s23 + $0xb8] sm:$0xff] %vm246_vm0, %v1674_v43  ;;  %v1605_v0 = vadd.f32 %v1467_v48, %v1353_v19  ;;  %v1606_v55 = vadd.f32 %v1467_v48, %v1354_v30  ;;  %v1615_v15 = vadd.f32 %v1492_v52, %v1363_v57  ;;  %v2008_v57 = vld [vmem:[%s2080_s15 + $0x130] sm:$0xff]  ;;  %v2010_v43 = vld [vmem:[%s2080_s15 + $0x180] sm:$0xff] }
 0x231   : > { %1755 = vst [vmem:[%s3339_s23 + $0x100] sm:$0xff] %v1683_v26  ;;  %1756 = vst.msk [vmem:[%s3339_s23 + $0x108] sm:$0xff] %vm246_vm0, %v1684_v44  ;;  %v1616_v12 = vadd.f32 %v1492_v52, %v1364_v21  ;;  %v1365_v50 = vmul.f32 %v2008_v57, %v3292_v58  ;;  %v2009_v21 = vld [vmem:[%s2080_s15 + $0x138] sm:$0xff]  ;;  %v1375_v26 = vmul.f32 %v2010_v43, %v3306_v17  ;;  %v2011_v44 = vld [vmem:[%s2080_s15 + $0x188] sm:$0xff] }
 0x232   : > { %v1677_v36 = vmax.f32 %v1605_v0, 0.0  ;;  %v1678_v23 = vmax.f32 %v1606_v55, 0.0  ;;  %v1687_v45 = vmax.f32 %v1615_v15, 0.0  ;;  %v1366_v16 = vmul.f32 %v2009_v21, %v3292_v58 }
 0x233   : > { %v1688_v2 = vmax.f32 %v1616_v12, 0.0  ;;  %v1477_v24 = vpop.permute.xlu1 %1476  ;;  %v1502_v3 = vpop.permute.xlu0 %1501  ;;  %v1376_v48 = vmul.f32 %v2011_v44, %v3306_v17 }
 0x234   : > { %1749 = vst [vmem:[%s3339_s23 + $0xd0] sm:$0xff] %v1677_v36  ;;  %1750 = vst.msk [vmem:[%s3339_s23 + $0xd8] sm:$0xff] %vm246_vm0, %v1678_v23  ;;  %v1609_v4 = vadd.f32 %v1477_v24, %v1357_v63  ;;  %v1610_v1 = vadd.f32 %v1477_v24, %v1358_v37  ;;  %v1619_v11 = vadd.f32 %v1502_v3, %v1367_v41  ;;  %v2012_v37 = vld [vmem:[%s2080_s15 + $0x150] sm:$0xff]  ;;  %v2013_v41 = vld [vmem:[%s2080_s15 + $0x158] sm:$0xff] }
 0x235   : > { %1759 = vst [vmem:[%s3339_s23 + $0x120] sm:$0xff] %v1687_v45  ;;  %1760 = vst.msk [vmem:[%s3339_s23 + $0x128] sm:$0xff] %vm246_vm0, %v1688_v2  ;;  %v1620_v56 = vadd.f32 %v1502_v3, %v1368_v8  ;;  %v1369_v51 = vmul.f32 %v2012_v37, %v3296_v31  ;;  %v1370_v6 = vmul.f32 %v2013_v41, %v3296_v31  ;;  %v2014_v8 = vld [vmem:[%s2080_s15 + $0x1a0] sm:$0xff]  ;;  %v2015_v23 = vld [vmem:[%s2080_s15 + $0x1a8] sm:$0xff] }
 0x236   : > { %v1681_v22 = vmax.f32 %v1609_v4, 0.0  ;;  %v1682_v29 = vmax.f32 %v1610_v1, 0.0  ;;  %v1691_v18 = vmax.f32 %v1619_v11, 0.0  ;;  %v1379_v36 = vmul.f32 %v2014_v8, %v3310_v47 }
 0x237   : > { %v1692_v7 = vmax.f32 %v1620_v56, 0.0  ;;  %v1487_v19 = vpop.permute.xlu1 %1486  ;;  %v1512_v59 = vpop.permute.xlu0 %1511  ;;  %v1380_v45 = vmul.f32 %v2015_v23, %v3310_v47 }
 0x238   : > { %1753 = vst [vmem:[%s3339_s23 + $0xf0] sm:$0xff] %v1681_v22  ;;  %1754 = vst.msk [vmem:[%s3339_s23 + $0xf8] sm:$0xff] %vm246_vm0, %v1682_v29  ;;  %v1613_v60 = vadd.f32 %v1487_v19, %v1361_v32  ;;  %v1614_v30 = vadd.f32 %v1487_v19, %v1362_v35  ;;  %v1623_v40 = vadd.f32 %v1512_v59, %v1371_v28  ;;  %v2016_v32 = vld [vmem:[%s2080_s15 + $0x170] sm:$0xff]  ;;  %v2017_v35 = vld [vmem:[%s2080_s15 + $0x178] sm:$0xff] }
 0x239   : > { %1763 = vst [vmem:[%s3339_s23 + $0x140] sm:$0xff] %v1691_v18  ;;  %1764 = vst.msk [vmem:[%s3339_s23 + $0x148] sm:$0xff] %vm246_vm0, %v1692_v7  ;;  %v1624_v39 = vadd.f32 %v1512_v59, %v1372_v46  ;;  %v1373_v14 = vmul.f32 %v2016_v32, %v3300_v34  ;;  %v1374_v42 = vmul.f32 %v2017_v35, %v3300_v34  ;;  %v2018_v28 = vld [vmem:[%s2080_s15 + $0x1c0] sm:$0xff]  ;;  %v2019_v46 = vld [vmem:[%s2080_s15 + $0x1c8] sm:$0xff] }
 0x23a   : > { %v1685_v52 = vmax.f32 %v1613_v60, 0.0  ;;  %v1686_v0 = vmax.f32 %v1614_v30, 0.0  ;;  %v1695_v55 = vmax.f32 %v1623_v40, 0.0  ;;  %v1383_v20 = vmul.f32 %v2018_v28, %v3314_v10 }
 0x23b   : > { %v1696_v15 = vmax.f32 %v1624_v39, 0.0  ;;  %v1497_v12 = vpop.permute.xlu1 %1496  ;;  %v1522_v25 = vpop.permute.xlu0 %1521  ;;  %v1384_v22 = vmul.f32 %v2019_v46, %v3314_v10  ;;  %v2020_v39 = vld [vmem:[%s2080_s15 + $0x190] sm:$0xff] }
 0x23c   : > { %1757 = vst [vmem:[%s3339_s23 + $0x110] sm:$0xff] %v1685_v52  ;;  %1758 = vst.msk [vmem:[%s3339_s23 + $0x118] sm:$0xff] %vm246_vm0, %v1686_v0  ;;  %v1617_v58 = vadd.f32 %v1497_v12, %v1365_v50  ;;  %v1618_v63 = vadd.f32 %v1497_v12, %v1366_v16  ;;  %v1627_v53 = vadd.f32 %v1522_v25, %v1375_v26  ;;  %v2021_v50 = vld [vmem:[%s2080_s15 + $0x198] sm:$0xff]  ;;  %v2022_v16 = vld [vmem:[%s2080_s15 + $0x1e0] sm:$0xff] }
 0x23d   : > { %1767 = vst [vmem:[%s3339_s23 + $0x160] sm:$0xff] %v1695_v55  ;;  %1768 = vst.msk [vmem:[%s3339_s23 + $0x168] sm:$0xff] %vm246_vm0, %v1696_v15  ;;  %v1628_v17 = vadd.f32 %v1522_v25, %v1376_v48  ;;  %v1377_v57 = vmul.f32 %v2020_v39, %v3304_v5  ;;  %v1378_v21 = vmul.f32 %v2021_v50, %v3304_v5  ;;  %v2023_v26 = vld [vmem:[%s2080_s15 + $0x1e8] sm:$0xff] }
 0x23e   : > { %v1689_v2 = vmax.f32 %v1617_v58, 0.0  ;;  %v1690_v24 = vmax.f32 %v1618_v63, 0.0  ;;  %v1699_v3 = vmax.f32 %v1627_v53, 0.0  ;;  %v1387_v43 = vmul.f32 %v2022_v16, %v3318_v62  ;;  %v2024_v63 = vld [vmem:[%s2080_s15 + $0x1b0] sm:$0xff] }
 0x23f   : > { %v1700_v4 = vmax.f32 %v1628_v17, 0.0  ;;  %v1507_v1 = vpop.permute.xlu1 %1506  ;;  %v1532_v11 = vpop.permute.xlu0 %1531  ;;  %v1388_v44 = vmul.f32 %v2023_v26, %v3318_v62  ;;  %v1381_v53 = vmul.f32 %v2024_v63, %v3308_v33  ;;  %v2025_v17 = vld [vmem:[%s2080_s15 + $0x1b8] sm:$0xff]  ;;  %v2034_v16 = vld [vmem:[%s2080_s15 + $0x210] sm:$0xff] }
 0x240   : > { %1761 = vst [vmem:[%s3339_s23 + $0x130] sm:$0xff] %v1689_v2  ;;  %1762 = vst.msk [vmem:[%s3339_s23 + $0x138] sm:$0xff] %vm246_vm0, %v1690_v24  ;;  %v1621_v31 = vadd.f32 %v1507_v1, %v1369_v51  ;;  %v1622_v56 = vadd.f32 %v1507_v1, %v1370_v6  ;;  %v1631_v38 = vadd.f32 %v1532_v11, %v1379_v36  ;;  %v2026_v51 = vld [vmem:[%s2080_s15 + $0x200] sm:$0xff]  ;;  %v2027_v6 = vld [vmem:[%s2080_s15 + $0x208] sm:$0xff] }
 0x241   : > { %1771 = vst [vmem:[%s3339_s23 + $0x180] sm:$0xff] %v1699_v3  ;;  %1772 = vst.msk [vmem:[%s3339_s23 + $0x188] sm:$0xff] %vm246_vm0, %v1700_v4  ;;  %v1632_v47 = vadd.f32 %v1532_v11, %v1380_v45  ;;  %v1382_v37 = vmul.f32 %v2025_v17, %v3308_v33  ;;  %v1391_v41 = vmul.f32 %v2026_v51, %v3322_v49  ;;  %v2028_v11 = vld [vmem:[%s2080_s15 + $0x1d0] sm:$0xff] }
 0x242   : > { %v1693_v29 = vmax.f32 %v1621_v31, 0.0  ;;  %v1694_v18 = vmax.f32 %v1622_v56, 0.0  ;;  %v1703_v7 = vmax.f32 %v1631_v38, 0.0  ;;  %v1392_v8 = vmul.f32 %v2027_v6, %v3322_v49  ;;  %v2029_v56 = vld [vmem:[%s2080_s15 + $0x1d8] sm:$0xff] }
 0x243   : > { %v1704_v19 = vmax.f32 %v1632_v47, 0.0  ;;  %v1517_v59 = vpop.permute.xlu1 %1516  ;;  %v1542_v60 = vpop.permute.xlu0 %1541  ;;  %v1385_v31 = vmul.f32 %v2028_v11, %v3312_v9  ;;  %v1386_v38 = vmul.f32 %v2029_v56, %v3312_v9  ;;  %v2030_v47 = vld [vmem:[%s2080_s15 + $0x220] sm:$0xff] }
 0x244   : > { %1765 = vst [vmem:[%s3339_s23 + $0x150] sm:$0xff] %v1693_v29  ;;  %1766 = vst.msk [vmem:[%s3339_s23 + $0x158] sm:$0xff] %vm246_vm0, %v1694_v18  ;;  %v1625_v34 = vadd.f32 %v1517_v59, %v1373_v14  ;;  %v1626_v30 = vadd.f32 %v1517_v59, %v1374_v42  ;;  %v1635_v40 = vadd.f32 %v1542_v60, %v1383_v20  ;;  %v2031_v14 = vld [vmem:[%s2080_s15 + $0x228] sm:$0xff] }
 0x245   : > { %1775 = vst [vmem:[%s3339_s23 + $0x1a0] sm:$0xff] %v1703_v7  ;;  %1776 = vst.msk [vmem:[%s3339_s23 + $0x1a8] sm:$0xff] %vm246_vm0, %v1704_v19  ;;  %v1636_v10 = vadd.f32 %v1542_v60, %v1384_v22  ;;  %v1395_v32 = vmul.f32 %v2030_v47, %v3328_v13  ;;  %v1396_v35 = vmul.f32 %v2031_v14, %v3328_v13  ;;  %v2032_v19 = vld [vmem:[%s2080_s15 + $0x1f0] sm:$0xff]  ;;  %v2033_v60 = vld [vmem:[%s2080_s15 + $0x1f8] sm:$0xff] }
 0x246   : > { %v1697_v48 = vmax.f32 %v1625_v34, 0.0  ;;  %v1698_v52 = vmax.f32 %v1626_v30, 0.0  ;;  %v1707_v0 = vmax.f32 %v1635_v40, 0.0  ;;  %v1389_v59 = vmul.f32 %v2032_v19, %v3316_v54 }
 0x247   : > { %v1708_v55 = vmax.f32 %v1636_v10, 0.0  ;;  %v1527_v15 = vpop.permute.xlu1 %1526  ;;  %v1552_v12 = vpop.permute.xlu0 %1551  ;;  %v1390_v34 = vmul.f32 %v2033_v60, %v3316_v54  ;;  %v1393_v54 = vmul.f32 %v2034_v16, %v3320_v27 }
 0x248   : > { %1769 = vst [vmem:[%s3339_s23 + $0x170] sm:$0xff] %v1697_v48  ;;  %1770 = vst.msk [vmem:[%s3339_s23 + $0x178] sm:$0xff] %vm246_vm0, %v1698_v52  ;;  %v1629_v5 = vadd.f32 %v1527_v15, %v1377_v57  ;;  %v1630_v25 = vadd.f32 %v1527_v15, %v1378_v21  ;;  %v1639_v58 = vadd.f32 %v1552_v12, %v1387_v43  ;;  %v2035_v43 = vld [vmem:[%s2080_s15 + $0x218] sm:$0xff]  ;;  %v2036_v15 = vld [vmem:[%s2080_s15 + $0x230] sm:$0xff] }
 0x249   : > { %1779 = vst [vmem:[%s3339_s23 + $0x1c0] sm:$0xff] %v1707_v0  ;;  %1780 = vst.msk [vmem:[%s3339_s23 + $0x1c8] sm:$0xff] %vm246_vm0, %v1708_v55  ;;  %v1640_v62 = vadd.f32 %v1552_v12, %v1388_v44  ;;  %v1394_v26 = vmul.f32 %v2035_v43, %v3320_v27  ;;  %v1397_v12 = vmul.f32 %v2036_v15, %v3324_v61 }
 0x24a   : > { %v1701_v36 = vmax.f32 %v1629_v5, 0.0  ;;  %v1702_v23 = vmax.f32 %v1630_v25, 0.0  ;;  %v1711_v45 = vmax.f32 %v1639_v58, 0.0  ;;  %v2037_v5 = vld [vmem:[%s2080_s15 + $0x238] sm:$0xff] }
 0x24b   : > { %v1712_v2 = vmax.f32 %v1640_v62, 0.0  ;;  %v1537_v24 = vpop.permute.xlu1 %1536  ;;  %v1562_v3 = vpop.permute.xlu0 %1561  ;;  %v1398_v25 = vmul.f32 %v2037_v5, %v3324_v61 }
 0x24c   : > { %1773 = vst [vmem:[%s3339_s23 + $0x190] sm:$0xff] %v1701_v36  ;;  %1774 = vst.msk [vmem:[%s3339_s23 + $0x198] sm:$0xff] %vm246_vm0, %v1702_v23  ;;  %v1633_v33 = vadd.f32 %v1537_v24, %v1381_v53  ;;  %v1634_v4 = vadd.f32 %v1537_v24, %v1382_v37  ;;  %v1643_v1 = vadd.f32 %v1562_v3, %v1391_v41 }
 0x24d   : > { %1783 = vst [vmem:[%s3339_s23 + $0x1e0] sm:$0xff] %v1711_v45  ;;  %1784 = vst.msk [vmem:[%s3339_s23 + $0x1e8] sm:$0xff] %vm246_vm0, %v1712_v2  ;;  %v1644_v49 = vadd.f32 %v1562_v3, %v1392_v8 }
 0x24e   : > { %v1705_v42 = vmax.f32 %v1633_v33, 0.0  ;;  %v1706_v28 = vmax.f32 %v1634_v4, 0.0  ;;  %v1715_v20 = vmax.f32 %v1643_v1, 0.0 }
 0x24f   : > { %v1716_v46 = vmax.f32 %v1644_v49, 0.0  ;;  %v1547_v22 = vpop.permute.xlu1 %1546  ;;  %v1572_v29 = vpop.permute.xlu0 %1571 }
 0x250   : > { %1777 = vst [vmem:[%s3339_s23 + $0x1b0] sm:$0xff] %v1705_v42  ;;  %1778 = vst.msk [vmem:[%s3339_s23 + $0x1b8] sm:$0xff] %vm246_vm0, %v1706_v28  ;;  %v1637_v9 = vadd.f32 %v1547_v22, %v1385_v31  ;;  %v1638_v18 = vadd.f32 %v1547_v22, %v1386_v38  ;;  %v1647_v13 = vadd.f32 %v1572_v29, %v1395_v32 }
 0x251   : > { %1787 = vst [vmem:[%s3339_s23 + $0x200] sm:$0xff] %v1715_v20  ;;  %1788 = vst.msk [vmem:[%s3339_s23 + $0x208] sm:$0xff] %vm246_vm0, %v1716_v46  ;;  %v1648_v7 = vadd.f32 %v1572_v29, %v1396_v35 }
 0x252   : > { %v1709_v30 = vmax.f32 %v1637_v9, 0.0  ;;  %v1710_v40 = vmax.f32 %v1638_v18, 0.0  ;;  %v1719_v10 = vmax.f32 %v1647_v13, 0.0 }
 0x253   : > { %v1720_v39 = vmax.f32 %v1648_v7, 0.0  ;;  %v1557_v57 = vpop.permute.xlu1 %1556 }
 0x254   : > { %1781 = vst [vmem:[%s3339_s23 + $0x1d0] sm:$0xff] %v1709_v30  ;;  %1782 = vst.msk [vmem:[%s3339_s23 + $0x1d8] sm:$0xff] %vm246_vm0, %v1710_v40  ;;  %v1641_v50 = vadd.f32 %v1557_v57, %v1389_v59  ;;  %v1642_v21 = vadd.f32 %v1557_v57, %v1390_v34 }
 0x255   : > { %1791 = vst [vmem:[%s3339_s23 + $0x220] sm:$0xff] %v1719_v10  ;;  %1792 = vst.msk [vmem:[%s3339_s23 + $0x228] sm:$0xff] %vm246_vm0, %v1720_v39 }
 0x256   : > { %v1713_v44 = vmax.f32 %v1641_v50, 0.0  ;;  %v1714_v48 = vmax.f32 %v1642_v21, 0.0 }
 0x257   : > { %v1567_v52 = vpop.permute.xlu1 %1566 }
 0x258   : > { %1785 = vst [vmem:[%s3339_s23 + $0x1f0] sm:$0xff] %v1713_v44  ;;  %1786 = vst.msk [vmem:[%s3339_s23 + $0x1f8] sm:$0xff] %vm246_vm0, %v1714_v48  ;;  %v1645_v0 = vadd.f32 %v1567_v52, %v1393_v54  ;;  %v1646_v55 = vadd.f32 %v1567_v52, %v1394_v26 }
 0x25a   : > { %v1717_v58 = vmax.f32 %v1645_v0, 0.0  ;;  %v1718_v62 = vmax.f32 %v1646_v55, 0.0 }
 0x25b   : > { %v1577_v27 = vpop.permute.xlu1 %1576 }
 0x25c   : > { %1789 = vst [vmem:[%s3339_s23 + $0x210] sm:$0xff] %v1717_v58  ;;  %1790 = vst.msk [vmem:[%s3339_s23 + $0x218] sm:$0xff] %vm246_vm0, %v1718_v62  ;;  %v1649_v63 = vadd.f32 %v1577_v27, %v1397_v12  ;;  %v1650_v53 = vadd.f32 %v1577_v27, %v1398_v25 }
 0x25e   : > { %v1721_v17 = vmax.f32 %v1649_v63, 0.0  ;;  %v1722_v37 = vmax.f32 %v1650_v53, 0.0 }
 0x260   : > { %1793 = vst [vmem:[%s3339_s23 + $0x230] sm:$0xff] %v1721_v17  ;;  %1794 = vst.msk [vmem:[%s3339_s23 + $0x238] sm:$0xff] %vm246_vm0, %v1722_v37 }
 0x261 PF: > { %s12_s9 = sadd.s32 1, %s2044_s9  }
 0x262   : > { %p9_p4 = scmp.ge.s32.totalorder %s12_s9, 4  }
 0x264   :  { %11 = sbr.rel (!%p9_p4) target bundleno = 1 (0x1), region = 61 }

</bundles_post_ra>
